<compile_context>
chip_gen: v6e
topology: v6e:2x2x1
jax: 0.10.0
libtpu: 0.0.40
codegen_flags: <defaults>
</compile_context>

<pallas_src>
import functools
import math

import jax
import jax.numpy as jnp
from jax.experimental import pallas as pl
from jax.experimental.pallas import tpu as pltpu


def _round_up(n, m):
    return ((n + m - 1) // m) * m


def _full_spec(a):
    nd = a.ndim
    return pl.BlockSpec(tuple(a.shape), lambda *args, _nd=nd: (0,) * _nd)


# -----------------------------------------------------------------------------
# Fused kernel: [Conv1d + BN + ReLU + Chomp] * L  ->  SelfAttention
# -----------------------------------------------------------------------------
def _fused_forward_kernel(*refs, B, T, rows_pad, cfg, eps, self_attn, matmul_dtype):
    """cfg: static tuple of (kernel, dilation, pad, Cin, Cout) per conv layer."""
    n_layers = len(cfg)
    x_ref = refs[0]
    layer_refs = refs[1:1 + 2 * n_layers]            # (w_flat, gamma_beta) / layer
    aw_ref, ab_ref, o_ref, taps_ref = refs[1 + 2 * n_layers:]

    # One-time clear of the im2col scratch: covers the lane padding beyond k*Cin
    # (stale VMEM may be NaN) and all rows; per layer we only re-zero the causal
    # padding rows of each tap.  (Scratch is f32 so unaligned sub-tile stores
    # stay 32-bit; operands are cast to `matmul_dtype` only at the MXU boundary.)
    taps_ref[...] = jnp.zeros(taps_ref.shape, taps_ref.dtype)

    h = x_ref[...].astype(jnp.float32)               # (B, T, Cin0)

    for li, (k, d, pad, cin, cout) in enumerate(cfg):
        w_ref, gb_ref = layer_refs[2 * li:2 * li + 2]
        t_out = T + pad                              # Conv1d output length pre-Chomp

        # ---- compact im2col, entirely in VMEM:
        # taps[b*rows_pad + t, j*cin + c] == x_padded[b, t + j*d, c]
        #                                 == h[b, t - (k-1-j)*d, c]  (0 outside [0,T))
        for b in range(B):
            base = b * rows_pad                      # multiple of 8 (sublane aligned)
            for j in range(k):
                t0 = (k - 1 - j) * d                 # causal delay of tap j
                lane0 = j * cin
                if li > 0:
                    # Re-zero only the padding rows this tap actually reads
                    # (layer 0 sees the freshly-zeroed scratch).
                    if t0 > 0:
                        taps_ref[base:base + t0, lane0:lane0 + cin] = (
                            jnp.zeros((t0, cin), jnp.float32))
                    if t0 < pad:
                        taps_ref[base + t0 + T:base + t_out, lane0:lane0 + cin] = (
                            jnp.zeros((pad - t0, cin), jnp.float32))
                taps_ref[base + t0:base + t0 + T, lane0:lane0 + cin] = h[b]

        # ---- one 2-D MXU matmul per layer (batch flattened into M; lane padding
        #      beyond k*cin hits zero weight rows so it contributes exactly 0).
        taps = taps_ref[...].astype(matmul_dtype)
        acc = jnp.dot(taps, w_ref[...],
                      preferred_element_type=jnp.float32)      # (B*rows_pad, cout)
        acc = acc.reshape(B, rows_pad, cout)
        # NOTE: Conv1d bias omitted on purpose: a per-channel bias only shifts the
        # batch mean, which training-mode BatchNorm subtracts -> exact no-op.

        # ---- BatchNorm1d (training-mode batch stats over the un-chomped (B, t_out)
        #      positions), centred two-pass variance, affine folded, then ReLU.
        row_ids = jax.lax.broadcasted_iota(jnp.int32, (B, rows_pad, 1), 1)
        valid = (row_ids < t_out).astype(jnp.float32)           # mask alignment rows
        inv_n = 1.0 / float(B * t_out)
        mean = jnp.sum(acc * valid, axis=(0, 1), keepdims=True) * inv_n
        cent = (acc - mean) * valid
        var = jnp.sum(cent * cent, axis=(0, 1), keepdims=True) * inv_n
        gb = gb_ref[...]                                        # (2, cout)
        scale = gb[0][None, None, :] * jax.lax.rsqrt(var + eps)
        shift = gb[1][None, None, :] - mean * scale
        # Chomp1d (keep the first T steps) fused with the BN affine + ReLU.
        h = jnp.maximum(acc[:, :T, :] * scale + shift, 0.0)     # (B, T, cout)

    if self_attn:
        aw = aw_ref[...]                                        # (T, D)
        ab = ab_ref[...]                                        # (T, 1)
        scores = jnp.sum(h * aw[None, :, :], axis=-1, keepdims=True) + ab[None, :, :]
        alpha = jnp.tanh(scores)                                # (B, T, 1)
        if T >= 128:
            # Large T: route the T-reduction through the MXU instead of the XLU.
            o_ref[...] = jnp.einsum("bt,btd->bd", alpha[..., 0], h,
                                    preferred_element_type=jnp.float32)
        else:
            o_ref[...] = jnp.sum(alpha * h, axis=1)             # (B, D) on VPU/XLU
    else:
        o_ref[...] = h[:, T - 1, :]                             # last time step


# -----------------------------------------------------------------------------
# Host wrapper: single pallas_call, no host-side activation glue.
# -----------------------------------------------------------------------------
def cpu_model_forward(params, x, *, trace_kernel_sizes, dilation=3, self_attn=True,
                      eps=1e-5, matmul_dtype=jnp.bfloat16):
    B, T, c0 = x.shape
    convs = params["conv"]
    assert len(convs) == len(trace_kernel_sizes)

    cfg = []
    cin = c0
    for i, ((w, _b, _g, _be), k) in enumerate(zip(convs, trace_kernel_sizes)):
        d = dilation ** i
        pad = (k - 1) * d
        cout = w.shape[-1]
        assert w.shape == (k, cin, cout)
        cfg.append((k, d, pad, cin, cout))
        cin = cout
    cfg = tuple(cfg)
    D = cfg[-1][4]
    pad_max = max(c[2] for c in cfg)
    rows_pad = _round_up(T + pad_max, 8)                 # per-batch origin 8-aligned
    k_lanes = _round_up(max(c[0] * c[3] for c in cfg), 128)   # compact, lane-dense K

    inputs = [x.astype(jnp.float32)]
    in_specs = [_full_spec(x)]
    for (k, _d, _pad, cin_l, cout), (w, _b, g, be) in zip(cfg, convs):
        # w_flat[j*cin + c, o] = w[j, c, o]; rows >= k*cin are zero.
        w_flat = jnp.zeros((k_lanes, cout), matmul_dtype)
        w_flat = w_flat.at[:k * cin_l, :].set(
            w.reshape(k * cin_l, cout).astype(matmul_dtype))
        gb = jnp.stack([g, be]).astype(jnp.float32)      # pack gamma/beta: (2, cout)
        inputs += [w_flat, gb]
        in_specs += [_full_spec(w_flat), _full_spec(gb)]
    aw = params["atten_w"].astype(jnp.float32)
    ab = params["atten_bias"].astype(jnp.float32)
    inputs += [aw, ab]
    in_specs += [_full_spec(aw), _full_spec(ab)]

    # Explicit scoped-VMEM budget (review: re-derive for v7x's 64 MiB).
    max_cout = max(c[4] for c in cfg)
    est = (B * rows_pad * k_lanes * 4                    # taps scratch (f32)
           + sum(int(a.size) * a.dtype.itemsize for a in inputs)
           + 8 * B * rows_pad * max_cout * 4             # f32 temporaries
           + B * D * 4)
    vmem_limit = int(min(max(4 * est, 16 * 1024 * 1024), 64 * 1024 * 1024))

    kern = functools.partial(_fused_forward_kernel, B=B, T=T, rows_pad=rows_pad,
                             cfg=cfg, eps=eps, self_attn=self_attn,
                             matmul_dtype=matmul_dtype)

    return pl.pallas_call(
        kern,
        out_shape=jax.ShapeDtypeStruct((B, D), jnp.float32),
        in_specs=in_specs,
        out_specs=pl.BlockSpec((B, D), lambda: (0, 0)),
        scratch_shapes=[pltpu.VMEM((B * rows_pad, k_lanes), jnp.float32)],
        compiler_params=pltpu.CompilerParams(vmem_limit_bytes=vmem_limit),
    )(*inputs)


# -----------------------------------------------------------------------------
# Parameter init (PyTorch-equivalent scales).
# -----------------------------------------------------------------------------
def init_params(key, input_dim, trace_hiddens, trace_kernel_sizes, chunk_length):
    params = {"conv": []}
    in_c = input_dim
    for out_c, k in zip(trace_hiddens, trace_kernel_sizes):
        key, kw, kb = jax.random.split(key, 3)
        bound = 1.0 / math.sqrt(in_c * k)                # Conv1d default init scale
        w = jax.random.uniform(kw, (k, in_c, out_c), jnp.float32, -bound, bound)
        b = jax.random.uniform(kb, (out_c,), jnp.float32, -bound, bound)
        gamma = jnp.ones((out_c,), jnp.float32)          # BatchNorm1d affine init
        beta = jnp.zeros((out_c,), jnp.float32)
        params["conv"].append((w, b, gamma, beta))
        in_c = out_c
    D = trace_hiddens[-1]
    stdv = math.sqrt(6.0 / (D + 1))                      # glorot on (seq_len, D, 1)
    key, ka = jax.random.split(key)
    params["atten_w"] = jax.random.uniform(
        ka, (chunk_length, D), jnp.float32, -stdv, stdv)
    params["atten_bias"] = jnp.zeros((chunk_length, 1), jnp.float32)
    return params


# -----------------------------------------------------------------------------
# Pure-JAX reference (mirrors the PyTorch module semantics).  `matmul_dtype`
# optionally quantizes the conv-matmul operands the same way the kernel does,
# so the kernel can be checked tightly at matched precision.
# -----------------------------------------------------------------------------
def _reference_forward(params, x, *, trace_kernel_sizes, dilation=3, self_attn=True,
                       eps=1e-5, matmul_dtype=jnp.float32):
    h = x.astype(jnp.float32)
    for i, ((w, b, gamma, beta), k) in enumerate(zip(params["conv"],
                                                     trace_kernel_sizes)):
        d = dilation ** i
        pad = (k - 1) * d
        B, T, _cin = h.shape
        t_out = T + pad
        cout = w.shape[-1]
        hp = jnp.pad(h, ((0, 0), (pad, pad), (0, 0))).astype(matmul_dtype)
        wq = w.astype(matmul_dtype)                      # (k, cin, cout)
        acc = jnp.zeros((B, t_out, cout), jnp.float32)
        for j in range(k):
            xj = hp[:, j * d:j * d + t_out, :]
            acc = acc + jnp.einsum("btc,co->bto", xj, wq[j],
                                   preferred_element_type=jnp.float32)
        acc = acc + b[None, None, :]
        mean = acc.mean(axis=(0, 1), keepdims=True)
        var = jnp.mean((acc - mean) ** 2, axis=(0, 1), keepdims=True)  # biased (train)
        y = (acc - mean) * jax.lax.rsqrt(var + eps) * gamma[None, None, :] \
            + beta[None, None, :]
        h = jnp.maximum(y, 0.0)[:, :T, :]                # ReLU then Chomp1d
    if self_attn:
        aw, ab = params["atten_w"], params["atten_bias"]
        scores = jnp.sum(h * aw[None, :, :], axis=-1) + ab[:, 0][None, :]
        alpha = jnp.tanh(scores)
        return jnp.sum(alpha[:, :, None] * h, axis=1)
    return h[:, -1, :]


if __name__ == "__main__":
    # Module-default-like small shapes: x is (batch, chunk_length, input_dim).
    B, T, input_dim = 2, 30, 20
    trace_hiddens = [32, 64]
    trace_kernel_sizes = [3, 3]
    dilation = 3

    key = jax.random.PRNGKey(0)
    key, kx = jax.random.split(key)
    x = jax.random.normal(kx, (B, T, input_dim), jnp.float32)
    params = init_params(key, input_dim, trace_hiddens, trace_kernel_sizes,
                         chunk_length=T)

    # Run the default (bf16-matmul) performance configuration once.
    out = jax.block_until_ready(cpu_model_forward(
        params, x, trace_kernel_sizes=trace_kernel_sizes, dilation=dilation,
        self_attn=True))
    assert out.shape == (B, trace_hiddens[-1]), out.shape
    assert bool(jnp.all(jnp.isfinite(out))), "non-finite output"

    # Strict check: reference quantized at the same matmul boundary (bf16 operands,
    # f32 accumulation) -> remaining differences are accumulation order only.
    ref_q = jax.block_until_ready(_reference_forward(
        params, x, trace_kernel_sizes=trace_kernel_sizes, dilation=dilation,
        self_attn=True, matmul_dtype=jnp.bfloat16))
    assert bool(jnp.allclose(out, ref_q, rtol=5e-3, atol=5e-3)), (
        "mismatch vs matched-precision reference, max abs err = %e"
        % float(jnp.max(jnp.abs(out - ref_q))))

    # Coarse check against the full-f32 module semantics (documents the expected
    # bf16-operand quantization headroom).
    ref_f32 = jax.block_until_ready(_reference_forward(
        params, x, trace_kernel_sizes=trace_kernel_sizes, dilation=dilation,
        self_attn=True, matmul_dtype=jnp.float32))
    assert bool(jnp.allclose(out, ref_f32, rtol=1e-1, atol=1e-1)), (
        "bf16 path diverged from f32 semantics, max abs err = %e"
        % float(jnp.max(jnp.abs(out - ref_f32))))

    print("KERNEL_OK")
</pallas_src>

<mosaic_0001>
module attributes {stable_mosaic.version = 11 : i64} {
  func.func @_fused_forward_kernel(%arg0: memref<2x30x20xf32, #tpu.memory_space<vmem>>, %arg1: memref<128x32xbf16, #tpu.memory_space<vmem>>, %arg2: memref<2x32xf32, #tpu.memory_space<vmem>>, %arg3: memref<128x64xbf16, #tpu.memory_space<vmem>>, %arg4: memref<2x64xf32, #tpu.memory_space<vmem>>, %arg5: memref<30x64xf32, #tpu.memory_space<vmem>>, %arg6: memref<30x1xf32, #tpu.memory_space<vmem>>, %arg7: memref<2x64xf32, #tpu.memory_space<vmem>>, %arg8: memref<80x128xf32, #tpu.memory_space<vmem>>) attributes {dimension_semantics = [], scalar_prefetch = 0 : i64, scratch_operands = 1 : i64, tpu.core_type = #tpu.core_type<tc>} {
    %cst = arith.constant 0.000000e+00 : f32
    %0 = vector.broadcast %cst : f32 to vector<80x128xf32>
    %c0 = arith.constant 0 : index
    %c0_0 = arith.constant 0 : index
    %1 = vector.load %arg8[%c0, %c0_0] : memref<80x128xf32, #tpu.memory_space<vmem>>, vector<80x128xf32>
    tpu.vector_store %arg8[%c0, %c0_0], %0 {strides = array<i32>} : memref<80x128xf32, #tpu.memory_space<vmem>>, vector<80x128xf32>,
    %c0_1 = arith.constant 0 : index
    %c0_2 = arith.constant 0 : index
    %c0_3 = arith.constant 0 : index
    %2 = vector.load %arg0[%c0_1, %c0_2, %c0_3] : memref<2x30x20xf32, #tpu.memory_space<vmem>>, vector<2x30x20xf32>
    %3 = vector.extract_strided_slice %2 {offsets = [0, 0, 0], sizes = [1, 30, 20], strides = [1, 1, 1]} : vector<2x30x20xf32> to vector<1x30x20xf32>
    %4 = vector.shape_cast %3 : vector<1x30x20xf32> to vector<30x20xf32>
    %c2 = arith.constant 2 : index
    %c0_4 = arith.constant 0 : index
    %5 = vector.load %arg8[%c2, %c0_4] : memref<80x128xf32, #tpu.memory_space<vmem>>, vector<30x20xf32>
    tpu.vector_store %arg8[%c2, %c0_4], %4 {strides = array<i32>} : memref<80x128xf32, #tpu.memory_space<vmem>>, vector<30x20xf32>,
    %6 = vector.extract_strided_slice %2 {offsets = [0, 0, 0], sizes = [1, 30, 20], strides = [1, 1, 1]} : vector<2x30x20xf32> to vector<1x30x20xf32>
    %7 = vector.shape_cast %6 : vector<1x30x20xf32> to vector<30x20xf32>
    %c1 = arith.constant 1 : index
    %c20 = arith.constant 20 : index
    %8 = vector.load %arg8[%c1, %c20] : memref<80x128xf32, #tpu.memory_space<vmem>>, vector<30x20xf32>
    tpu.vector_store %arg8[%c1, %c20], %7 {strides = array<i32>} : memref<80x128xf32, #tpu.memory_space<vmem>>, vector<30x20xf32>,
    %9 = vector.extract_strided_slice %2 {offsets = [0, 0, 0], sizes = [1, 30, 20], strides = [1, 1, 1]} : vector<2x30x20xf32> to vector<1x30x20xf32>
    %10 = vector.shape_cast %9 : vector<1x30x20xf32> to vector<30x20xf32>
    %c0_5 = arith.constant 0 : index
    %c40 = arith.constant 40 : index
    %11 = vector.load %arg8[%c0_5, %c40] : memref<80x128xf32, #tpu.memory_space<vmem>>, vector<30x20xf32>
    tpu.vector_store %arg8[%c0_5, %c40], %10 {strides = array<i32>} : memref<80x128xf32, #tpu.memory_space<vmem>>, vector<30x20xf32>,
    %12 = vector.extract_strided_slice %2 {offsets = [1, 0, 0], sizes = [1, 30, 20], strides = [1, 1, 1]} : vector<2x30x20xf32> to vector<1x30x20xf32>
    %13 = vector.shape_cast %12 : vector<1x30x20xf32> to vector<30x20xf32>
    %c42 = arith.constant 42 : index
    %c0_6 = arith.constant 0 : index
    %14 = vector.load %arg8[%c42, %c0_6] : memref<80x128xf32, #tpu.memory_space<vmem>>, vector<30x20xf32>
    tpu.vector_store %arg8[%c42, %c0_6], %13 {strides = array<i32>} : memref<80x128xf32, #tpu.memory_space<vmem>>, vector<30x20xf32>,
    %15 = vector.extract_strided_slice %2 {offsets = [1, 0, 0], sizes = [1, 30, 20], strides = [1, 1, 1]} : vector<2x30x20xf32> to vector<1x30x20xf32>
    %16 = vector.shape_cast %15 : vector<1x30x20xf32> to vector<30x20xf32>
    %c41 = arith.constant 41 : index
    %c20_7 = arith.constant 20 : index
    %17 = vector.load %arg8[%c41, %c20_7] : memref<80x128xf32, #tpu.memory_space<vmem>>, vector<30x20xf32>
    tpu.vector_store %arg8[%c41, %c20_7], %16 {strides = array<i32>} : memref<80x128xf32, #tpu.memory_space<vmem>>, vector<30x20xf32>,
    %18 = vector.extract_strided_slice %2 {offsets = [1, 0, 0], sizes = [1, 30, 20], strides = [1, 1, 1]} : vector<2x30x20xf32> to vector<1x30x20xf32>
    %19 = vector.shape_cast %18 : vector<1x30x20xf32> to vector<30x20xf32>
    %c40_8 = arith.constant 40 : index
    %c40_9 = arith.constant 40 : index
    %20 = vector.load %arg8[%c40_8, %c40_9] : memref<80x128xf32, #tpu.memory_space<vmem>>, vector<30x20xf32>
    tpu.vector_store %arg8[%c40_8, %c40_9], %19 {strides = array<i32>} : memref<80x128xf32, #tpu.memory_space<vmem>>, vector<30x20xf32>,
    %c0_10 = arith.constant 0 : index
    %c0_11 = arith.constant 0 : index
    %21 = vector.load %arg8[%c0_10, %c0_11] : memref<80x128xf32, #tpu.memory_space<vmem>>, vector<80x128xf32>
    %22 = arith.truncf %21 : vector<80x128xf32> to vector<80x128xbf16>
    %c0_12 = arith.constant 0 : index
    %c0_13 = arith.constant 0 : index
    %23 = vector.load %arg1[%c0_12, %c0_13] : memref<128x32xbf16, #tpu.memory_space<vmem>>, vector<128x32xbf16>
    %cst_14 = arith.constant dense<0.000000e+00> : vector<80x32xf32>
    %24 = tpu.matmul %22, %23, %cst_14 {dimension_numbers = #tpu.dot_dimension_numbers<[1], [0], [0], [1], [0, 0, 1, 1], [], []>} : vector<80x128xbf16>, vector<128x32xbf16>, vector<80x32xf32> -> vector<80x32xf32>
    %25 = vector.shape_cast %24 : vector<80x32xf32> to vector<2x40x32xf32>
    %26 = tpu.iota {dimensions = array<i32: 1>} : vector<2x40x1xi32>
    %c32_i32 = arith.constant 32 : i32
    %27 = vector.broadcast %c32_i32 : i32 to vector<2x40x1xi32>
    %28 = arith.cmpi slt, %26, %27 : vector<2x40x1xi32>
    %29 = arith.extui %28 : vector<2x40x1xi1> to vector<2x40x1xi32>
    %30 = arith.sitofp %29 : vector<2x40x1xi32> to vector<2x40x1xf32>
    %31 = vector.broadcast %30 : vector<2x40x1xf32> to vector<2x40x32xf32>
    %32 = arith.mulf %25, %31 : vector<2x40x32xf32>
    %cst_15 = arith.constant dense<0.000000e+00> : vector<32xf32>
    %33 = vector.multi_reduction <add>, %32, %cst_15 [0, 1] : vector<2x40x32xf32> to vector<32xf32>
    %34 = vector.shape_cast %33 : vector<32xf32> to vector<1x1x32xf32>
    %cst_16 = arith.constant 1.562500e-02 : f32
    %35 = vector.broadcast %cst_16 : f32 to vector<1x1x32xf32>
    %36 = arith.mulf %34, %35 : vector<1x1x32xf32>
    %37 = vector.broadcast %36 : vector<1x1x32xf32> to vector<2x40x32xf32>
    %38 = arith.subf %25, %37 : vector<2x40x32xf32>
    %39 = vector.broadcast %30 : vector<2x40x1xf32> to vector<2x40x32xf32>
    %40 = arith.mulf %38, %39 : vector<2x40x32xf32>
    %41 = arith.mulf %40, %40 : vector<2x40x32xf32>
    %cst_17 = arith.constant dense<0.000000e+00> : vector<32xf32>
    %42 = vector.multi_reduction <add>, %41, %cst_17 [0, 1] : vector<2x40x32xf32> to vector<32xf32>
    %43 = vector.shape_cast %42 : vector<32xf32> to vector<1x1x32xf32>
    %cst_18 = arith.constant 1.562500e-02 : f32
    %44 = vector.broadcast %cst_18 : f32 to vector<1x1x32xf32>
    %45 = arith.mulf %43, %44 : vector<1x1x32xf32>
    %c0_19 = arith.constant 0 : index
    %c0_20 = arith.constant 0 : index
    %46 = vector.load %arg2[%c0_19, %c0_20] : memref<2x32xf32, #tpu.memory_space<vmem>>, vector<2x32xf32>
    %47 = vector.extract_strided_slice %46 {offsets = [0, 0], sizes = [1, 32], strides = [1, 1]} : vector<2x32xf32> to vector<1x32xf32>
    %48 = vector.shape_cast %47 : vector<1x32xf32> to vector<32xf32>
    %49 = vector.shape_cast %48 : vector<32xf32> to vector<1x1x32xf32>
    %cst_21 = arith.constant 9.99999974E-6 : f32
    %50 = vector.broadcast %cst_21 : f32 to vector<1x1x32xf32>
    %51 = arith.addf %45, %50 : vector<1x1x32xf32>
    %52 = math.rsqrt %51 : vector<1x1x32xf32>
    %53 = arith.mulf %49, %52 : vector<1x1x32xf32>
    %54 = vector.extract_strided_slice %46 {offsets = [1, 0], sizes = [1, 32], strides = [1, 1]} : vector<2x32xf32> to vector<1x32xf32>
    %55 = vector.shape_cast %54 : vector<1x32xf32> to vector<32xf32>
    %56 = vector.shape_cast %55 : vector<32xf32> to vector<1x1x32xf32>
    %57 = arith.mulf %36, %53 : vector<1x1x32xf32>
    %58 = arith.subf %56, %57 : vector<1x1x32xf32>
    %59 = vector.extract_strided_slice %25 {offsets = [0, 0, 0], sizes = [2, 30, 32], strides = [1, 1, 1]} : vector<2x40x32xf32> to vector<2x30x32xf32>
    %60 = vector.broadcast %53 : vector<1x1x32xf32> to vector<2x30x32xf32>
    %61 = arith.mulf %59, %60 : vector<2x30x32xf32>
    %62 = vector.broadcast %58 : vector<1x1x32xf32> to vector<2x30x32xf32>
    %63 = arith.addf %61, %62 : vector<2x30x32xf32>
    %cst_22 = arith.constant 0.000000e+00 : f32
    %64 = vector.broadcast %cst_22 : f32 to vector<2x30x32xf32>
    %65 = arith.maximumf %63, %64 : vector<2x30x32xf32>
    %cst_23 = arith.constant 0.000000e+00 : f32
    %66 = vector.broadcast %cst_23 : f32 to vector<6x32xf32>
    %c0_24 = arith.constant 0 : index
    %c0_25 = arith.constant 0 : index
    %67 = vector.load %arg8[%c0_24, %c0_25] : memref<80x128xf32, #tpu.memory_space<vmem>>, vector<6x32xf32>
    tpu.vector_store %arg8[%c0_24, %c0_25], %66 {strides = array<i32>} : memref<80x128xf32, #tpu.memory_space<vmem>>, vector<6x32xf32>,
    %68 = vector.extract_strided_slice %65 {offsets = [0, 0, 0], sizes = [1, 30, 32], strides = [1, 1, 1]} : vector<2x30x32xf32> to vector<1x30x32xf32>
    %69 = vector.shape_cast %68 : vector<1x30x32xf32> to vector<30x32xf32>
    %c6 = arith.constant 6 : index
    %c0_26 = arith.constant 0 : index
    %70 = vector.load %arg8[%c6, %c0_26] : memref<80x128xf32, #tpu.memory_space<vmem>>, vector<30x32xf32>
    tpu.vector_store %arg8[%c6, %c0_26], %69 {strides = array<i32>} : memref<80x128xf32, #tpu.memory_space<vmem>>, vector<30x32xf32>,
    %cst_27 = arith.constant 0.000000e+00 : f32
    %71 = vector.broadcast %cst_27 : f32 to vector<3x32xf32>
    %c0_28 = arith.constant 0 : index
    %c32 = arith.constant 32 : index
    %72 = vector.load %arg8[%c0_28, %c32] : memref<80x128xf32, #tpu.memory_space<vmem>>, vector<3x32xf32>
    tpu.vector_store %arg8[%c0_28, %c32], %71 {strides = array<i32>} : memref<80x128xf32, #tpu.memory_space<vmem>>, vector<3x32xf32>,
    %cst_29 = arith.constant 0.000000e+00 : f32
    %73 = vector.broadcast %cst_29 : f32 to vector<3x32xf32>
    %c33 = arith.constant 33 : index
    %c32_30 = arith.constant 32 : index
    %74 = vector.load %arg8[%c33, %c32_30] : memref<80x128xf32, #tpu.memory_space<vmem>>, vector<3x32xf32>
    tpu.vector_store %arg8[%c33, %c32_30], %73 {strides = array<i32>} : memref<80x128xf32, #tpu.memory_space<vmem>>, vector<3x32xf32>,
    %75 = vector.extract_strided_slice %65 {offsets = [0, 0, 0], sizes = [1, 30, 32], strides = [1, 1, 1]} : vector<2x30x32xf32> to vector<1x30x32xf32>
    %76 = vector.shape_cast %75 : vector<1x30x32xf32> to vector<30x32xf32>
    %c3 = arith.constant 3 : index
    %c32_31 = arith.constant 32 : index
    %77 = vector.load %arg8[%c3, %c32_31] : memref<80x128xf32, #tpu.memory_space<vmem>>, vector<30x32xf32>
    tpu.vector_store %arg8[%c3, %c32_31], %76 {strides = array<i32>} : memref<80x128xf32, #tpu.memory_space<vmem>>, vector<30x32xf32>,
    %cst_32 = arith.constant 0.000000e+00 : f32
    %78 = vector.broadcast %cst_32 : f32 to vector<6x32xf32>
    %c30 = arith.constant 30 : index
    %c64 = arith.constant 64 : index
    %79 = vector.load %arg8[%c30, %c64] : memref<80x128xf32, #tpu.memory_space<vmem>>, vector<6x32xf32>
    tpu.vector_store %arg8[%c30, %c64], %78 {strides = array<i32>} : memref<80x128xf32, #tpu.memory_space<vmem>>, vector<6x32xf32>,
    %80 = vector.extract_strided_slice %65 {offsets = [0, 0, 0], sizes = [1, 30, 32], strides = [1, 1, 1]} : vector<2x30x32xf32> to vector<1x30x32xf32>
    %81 = vector.shape_cast %80 : vector<1x30x32xf32> to vector<30x32xf32>
    %c0_33 = arith.constant 0 : index
    %c64_34 = arith.constant 64 : index
    %82 = vector.load %arg8[%c0_33, %c64_34] : memref<80x128xf32, #tpu.memory_space<vmem>>, vector<30x32xf32>
    tpu.vector_store %arg8[%c0_33, %c64_34], %81 {strides = array<i32>} : memref<80x128xf32, #tpu.memory_space<vmem>>, vector<30x32xf32>,
    %cst_35 = arith.constant 0.000000e+00 : f32
    %83 = vector.broadcast %cst_35 : f32 to vector<6x32xf32>
    %c40_36 = arith.constant 40 : index
    %c0_37 = arith.constant 0 : index
    %84 = vector.load %arg8[%c40_36, %c0_37] : memref<80x128xf32, #tpu.memory_space<vmem>>, vector<6x32xf32>
    tpu.vector_store %arg8[%c40_36, %c0_37], %83 {strides = array<i32>} : memref<80x128xf32, #tpu.memory_space<vmem>>, vector<6x32xf32>,
    %85 = vector.extract_strided_slice %65 {offsets = [1, 0, 0], sizes = [1, 30, 32], strides = [1, 1, 1]} : vector<2x30x32xf32> to vector<1x30x32xf32>
    %86 = vector.shape_cast %85 : vector<1x30x32xf32> to vector<30x32xf32>
    %c46 = arith.constant 46 : index
    %c0_38 = arith.constant 0 : index
    %87 = vector.load %arg8[%c46, %c0_38] : memref<80x128xf32, #tpu.memory_space<vmem>>, vector<30x32xf32>
    tpu.vector_store %arg8[%c46, %c0_38], %86 {strides = array<i32>} : memref<80x128xf32, #tpu.memory_space<vmem>>, vector<30x32xf32>,
    %cst_39 = arith.constant 0.000000e+00 : f32
    %88 = vector.broadcast %cst_39 : f32 to vector<3x32xf32>
    %c40_40 = arith.constant 40 : index
    %c32_41 = arith.constant 32 : index
    %89 = vector.load %arg8[%c40_40, %c32_41] : memref<80x128xf32, #tpu.memory_space<vmem>>, vector<3x32xf32>
    tpu.vector_store %arg8[%c40_40, %c32_41], %88 {strides = array<i32>} : memref<80x128xf32, #tpu.memory_space<vmem>>, vector<3x32xf32>,
    %cst_42 = arith.constant 0.000000e+00 : f32
    %90 = vector.broadcast %cst_42 : f32 to vector<3x32xf32>
    %c73 = arith.constant 73 : index
    %c32_43 = arith.constant 32 : index
    %91 = vector.load %arg8[%c73, %c32_43] : memref<80x128xf32, #tpu.memory_space<vmem>>, vector<3x32xf32>
    tpu.vector_store %arg8[%c73, %c32_43], %90 {strides = array<i32>} : memref<80x128xf32, #tpu.memory_space<vmem>>, vector<3x32xf32>,
    %92 = vector.extract_strided_slice %65 {offsets = [1, 0, 0], sizes = [1, 30, 32], strides = [1, 1, 1]} : vector<2x30x32xf32> to vector<1x30x32xf32>
    %93 = vector.shape_cast %92 : vector<1x30x32xf32> to vector<30x32xf32>
    %c43 = arith.constant 43 : index
    %c32_44 = arith.constant 32 : index
    %94 = vector.load %arg8[%c43, %c32_44] : memref<80x128xf32, #tpu.memory_space<vmem>>, vector<30x32xf32>
    tpu.vector_store %arg8[%c43, %c32_44], %93 {strides = array<i32>} : memref<80x128xf32, #tpu.memory_space<vmem>>, vector<30x32xf32>,
    %cst_45 = arith.constant 0.000000e+00 : f32
    %95 = vector.broadcast %cst_45 : f32 to vector<6x32xf32>
    %c70 = arith.constant 70 : index
    %c64_46 = arith.constant 64 : index
    %96 = vector.load %arg8[%c70, %c64_46] : memref<80x128xf32, #tpu.memory_space<vmem>>, vector<6x32xf32>
    tpu.vector_store %arg8[%c70, %c64_46], %95 {strides = array<i32>} : memref<80x128xf32, #tpu.memory_space<vmem>>, vector<6x32xf32>,
    %97 = vector.extract_strided_slice %65 {offsets = [1, 0, 0], sizes = [1, 30, 32], strides = [1, 1, 1]} : vector<2x30x32xf32> to vector<1x30x32xf32>
    %98 = vector.shape_cast %97 : vector<1x30x32xf32> to vector<30x32xf32>
    %c40_47 = arith.constant 40 : index
    %c64_48 = arith.constant 64 : index
    %99 = vector.load %arg8[%c40_47, %c64_48] : memref<80x128xf32, #tpu.memory_space<vmem>>, vector<30x32xf32>
    tpu.vector_store %arg8[%c40_47, %c64_48], %98 {strides = array<i32>} : memref<80x128xf32, #tpu.memory_space<vmem>>, vector<30x32xf32>,
    %c0_49 = arith.constant 0 : index
    %c0_50 = arith.constant 0 : index
    %100 = vector.load %arg8[%c0_49, %c0_50] : memref<80x128xf32, #tpu.memory_space<vmem>>, vector<80x128xf32>
    %101 = arith.truncf %100 : vector<80x128xf32> to vector<80x128xbf16>
    %c0_51 = arith.constant 0 : index
    %c0_52 = arith.constant 0 : index
    %102 = vector.load %arg3[%c0_51, %c0_52] : memref<128x64xbf16, #tpu.memory_space<vmem>>, vector<128x64xbf16>
    %cst_53 = arith.constant dense<0.000000e+00> : vector<80x64xf32>
    %103 = tpu.matmul %101, %102, %cst_53 {dimension_numbers = #tpu.dot_dimension_numbers<[1], [0], [0], [1], [0, 0, 1, 1], [], []>} : vector<80x128xbf16>, vector<128x64xbf16>, vector<80x64xf32> -> vector<80x64xf32>
    %104 = vector.shape_cast %103 : vector<80x64xf32> to vector<2x40x64xf32>
    %105 = tpu.iota {dimensions = array<i32: 1>} : vector<2x40x1xi32>
    %c36_i32 = arith.constant 36 : i32
    %106 = vector.broadcast %c36_i32 : i32 to vector<2x40x1xi32>
    %107 = arith.cmpi slt, %105, %106 : vector<2x40x1xi32>
    %108 = arith.extui %107 : vector<2x40x1xi1> to vector<2x40x1xi32>
    %109 = arith.sitofp %108 : vector<2x40x1xi32> to vector<2x40x1xf32>
    %110 = vector.broadcast %109 : vector<2x40x1xf32> to vector<2x40x64xf32>
    %111 = arith.mulf %104, %110 : vector<2x40x64xf32>
    %cst_54 = arith.constant dense<0.000000e+00> : vector<64xf32>
    %112 = vector.multi_reduction <add>, %111, %cst_54 [0, 1] : vector<2x40x64xf32> to vector<64xf32>
    %113 = vector.shape_cast %112 : vector<64xf32> to vector<1x1x64xf32>
    %cst_55 = arith.constant 0.013888889 : f32
    %114 = vector.broadcast %cst_55 : f32 to vector<1x1x64xf32>
    %115 = arith.mulf %113, %114 : vector<1x1x64xf32>
    %116 = vector.broadcast %115 : vector<1x1x64xf32> to vector<2x40x64xf32>
    %117 = arith.subf %104, %116 : vector<2x40x64xf32>
    %118 = vector.broadcast %109 : vector<2x40x1xf32> to vector<2x40x64xf32>
    %119 = arith.mulf %117, %118 : vector<2x40x64xf32>
    %120 = arith.mulf %119, %119 : vector<2x40x64xf32>
    %cst_56 = arith.constant dense<0.000000e+00> : vector<64xf32>
    %121 = vector.multi_reduction <add>, %120, %cst_56 [0, 1] : vector<2x40x64xf32> to vector<64xf32>
    %122 = vector.shape_cast %121 : vector<64xf32> to vector<1x1x64xf32>
    %cst_57 = arith.constant 0.013888889 : f32
    %123 = vector.broadcast %cst_57 : f32 to vector<1x1x64xf32>
    %124 = arith.mulf %122, %123 : vector<1x1x64xf32>
    %c0_58 = arith.constant 0 : index
    %c0_59 = arith.constant 0 : index
    %125 = vector.load %arg4[%c0_58, %c0_59] : memref<2x64xf32, #tpu.memory_space<vmem>>, vector<2x64xf32>
    %126 = vector.extract_strided_slice %125 {offsets = [0, 0], sizes = [1, 64], strides = [1, 1]} : vector<2x64xf32> to vector<1x64xf32>
    %127 = vector.shape_cast %126 : vector<1x64xf32> to vector<64xf32>
    %128 = vector.shape_cast %127 : vector<64xf32> to vector<1x1x64xf32>
    %cst_60 = arith.constant 9.99999974E-6 : f32
    %129 = vector.broadcast %cst_60 : f32 to vector<1x1x64xf32>
    %130 = arith.addf %124, %129 : vector<1x1x64xf32>
    %131 = math.rsqrt %130 : vector<1x1x64xf32>
    %132 = arith.mulf %128, %131 : vector<1x1x64xf32>
    %133 = vector.extract_strided_slice %125 {offsets = [1, 0], sizes = [1, 64], strides = [1, 1]} : vector<2x64xf32> to vector<1x64xf32>
    %134 = vector.shape_cast %133 : vector<1x64xf32> to vector<64xf32>
    %135 = vector.shape_cast %134 : vector<64xf32> to vector<1x1x64xf32>
    %136 = arith.mulf %115, %132 : vector<1x1x64xf32>
    %137 = arith.subf %135, %136 : vector<1x1x64xf32>
    %138 = vector.extract_strided_slice %104 {offsets = [0, 0, 0], sizes = [2, 30, 64], strides = [1, 1, 1]} : vector<2x40x64xf32> to vector<2x30x64xf32>
    %139 = vector.broadcast %132 : vector<1x1x64xf32> to vector<2x30x64xf32>
    %140 = arith.mulf %138, %139 : vector<2x30x64xf32>
    %141 = vector.broadcast %137 : vector<1x1x64xf32> to vector<2x30x64xf32>
    %142 = arith.addf %140, %141 : vector<2x30x64xf32>
    %cst_61 = arith.constant 0.000000e+00 : f32
    %143 = vector.broadcast %cst_61 : f32 to vector<2x30x64xf32>
    %144 = arith.maximumf %142, %143 : vector<2x30x64xf32>
    %c0_62 = arith.constant 0 : index
    %c0_63 = arith.constant 0 : index
    %145 = vector.load %arg5[%c0_62, %c0_63] : memref<30x64xf32, #tpu.memory_space<vmem>>, vector<30x64xf32>
    %c0_64 = arith.constant 0 : index
    %c0_65 = arith.constant 0 : index
    %146 = vector.load %arg6[%c0_64, %c0_65] : memref<30x1xf32, #tpu.memory_space<vmem>>, vector<30x1xf32>
    %147 = vector.shape_cast %145 : vector<30x64xf32> to vector<1x30x64xf32>
    %148 = vector.broadcast %147 : vector<1x30x64xf32> to vector<2x30x64xf32>
    %149 = arith.mulf %144, %148 : vector<2x30x64xf32>
    %cst_66 = arith.constant dense<0.000000e+00> : vector<2x30xf32>
    %150 = vector.multi_reduction <add>, %149, %cst_66 [2] : vector<2x30x64xf32> to vector<2x30xf32>
    %151 = vector.shape_cast %150 : vector<2x30xf32> to vector<2x30x1xf32>
    %152 = vector.shape_cast %146 : vector<30x1xf32> to vector<1x30x1xf32>
    %153 = vector.broadcast %152 : vector<1x30x1xf32> to vector<2x30x1xf32>
    %154 = arith.addf %151, %153 : vector<2x30x1xf32>
    %155 = math.tanh %154 : vector<2x30x1xf32>
    %156 = vector.broadcast %155 : vector<2x30x1xf32> to vector<2x30x64xf32>
    %157 = arith.mulf %156, %144 : vector<2x30x64xf32>
    %cst_67 = arith.constant dense<0.000000e+00> : vector<2x64xf32>
    %158 = vector.multi_reduction <add>, %157, %cst_67 [1] : vector<2x30x64xf32> to vector<2x64xf32>
    %c0_68 = arith.constant 0 : index
    %c0_69 = arith.constant 0 : index
    %159 = vector.load %arg7[%c0_68, %c0_69] : memref<2x64xf32, #tpu.memory_space<vmem>>, vector<2x64xf32>
    tpu.vector_store %arg7[%c0_68, %c0_69], %158 {strides = array<i32>} : memref<2x64xf32, #tpu.memory_space<vmem>>, vector<2x64xf32>,
    return
  }
}

</mosaic_0001>

<bundles_post_ra>
// kernel: tpu_custom_call.1
= control target key start
LH: loop header
LB: loop body
LE: loop exit
PB: predicated region body
PF: predicated region fallthrough
CT: control target
= control target key end

     0   :  { %vm46_vm0 = vcmask 162816   ;;  %s1169_s28 = smov 40   ;;  %v1170_v2 = vmov 0.0   ;;  %s1171_s29 = smov 20   ;;  %vm50_vm1 = vcmask 160768   ;;  %vm1172_vm2 = vmmov 0   ;;  %s1664_s0 = inlined_call_operand.vmem [shape: f32[2,30,20], index: 0, kind: input, shape index: {}]   ;;  %s1665_s1 = inlined_call_operand.vmem [shape: bf16[128,32], index: 1, kind: input, shape index: {}]   ;;  %s1666_s2 = inlined_call_operand.vmem [shape: f32[2,32], index: 2, kind: input, shape index: {}]   ;;  %s1667_s3 = inlined_call_operand.vmem [shape: bf16[128,64], index: 3, kind: input, shape index: {}]   ;;  %s1668_s4 = inlined_call_operand.vmem [shape: f32[2,64], index: 4, kind: input, shape index: {}]   ;;  %s1669_s5 = inlined_call_operand.vmem [shape: f32[30,64], index: 5, kind: input, shape index: {}]   ;;  %s1670_s6 = inlined_call_operand.vmem [shape: f32[30,1], index: 6, kind: input, shape index: {}]   ;;  %s1671_s7 = inlined_call_operand.hbm [shape: f32[2,64], index: 7, kind: output, shape index: {}]  }
   0x1   :  { %v38_v0 = vld [vmem:[%s1664_s0] sm:$0xff]  ;;  %v39_v1 = vld [vmem:[%s1664_s0 + $0x8] sm:$0xff]  ;;  %28 = vst [vmem:[#allocation2] sm:$0xff] %v1170_v2  ;;  %29 = vst [vmem:[#allocation2 + $0x8] sm:$0xff] %v1170_v2  ;;  %1029 = vmatprep.subr.bf16.mxu0 %v1170_v2  ;;  %1065 = vmatprep.subr.bf16.mxu1 %v1170_v2 }
   0x2   :  { %74 = vrot.lane.b32.xlu1 %v38_v0, %s1169_s28  ;;  %30 = vst [vmem:[#allocation2 + $0x10] sm:$0xff] %v1170_v2  ;;  %31 = vst [vmem:[#allocation2 + $0x18] sm:$0xff] %v1170_v2  ;;  %56 = vrot.lane.b32.xlu0 %v38_v0, %s1171_s29  ;;  %v41_v3 = vld [vmem:[%s1664_s0 + $0x18] sm:$0x3f]  ;;  %v40_v4 = vld [vmem:[%s1664_s0 + $0x10] sm:$0xff] }
   0x3   :  { %32 = vst [vmem:[#allocation2 + $0x20] sm:$0xff] %v1170_v2  ;;  %33 = vst [vmem:[#allocation2 + $0x28] sm:$0xff] %v1170_v2  ;;  %v42_v5 = vld [vmem:[%s1664_s0 + $0x20] sm:$0xff]  ;;  %v44_v6 = vld [vmem:[%s1664_s0 + $0x30] sm:$0xff]  ;;  %1045 = vmatprep.mubr.msk.bf16.mxu0 %vm1172_vm2, %v1170_v2  ;;  %1081 = vmatprep.mubr.msk.bf16.mxu1 %vm1172_vm2, %v1170_v2 }
   0x4   :  { %34 = vst [vmem:[#allocation2 + $0x30] sm:$0xff] %v1170_v2  ;;  %35 = vst [vmem:[#allocation2 + $0x38] sm:$0xff] %v1170_v2  ;;  %v43_v7 = vld [vmem:[%s1664_s0 + $0x28] sm:$0xff]  ;;  %v45_v8 = vld [vmem:[%s1664_s0 + $0x38] sm:$0x3f] }
   0x5   :  { %36 = vst [vmem:[#allocation2 + $0x40] sm:$0xff] %v1170_v2  ;;  %37 = vst [vmem:[#allocation2 + $0x48] sm:$0xff] %v1170_v2  ;;  %v1111_v9 = vld [vmem:[%s1665_s1 + $0x38] sm:$0xff]   ;;  %v1112_v10 = vld [vmem:[%s1665_s1 + $0x30] sm:$0xff]  }
   0x6   :  { %47 = vst.msk [vmem:[#allocation2 + $0x2] sm:$0xff] %vm46_vm0, %v38_v0  ;;  %48 = vst.msk [vmem:[#allocation2 + $0xa] sm:$0xff] %vm46_vm0, %v39_v1  ;;  %76 = vrot.lane.b32.xlu1 %v39_v1, %s1169_s28  ;;  %58 = vrot.lane.b32.xlu0 %v39_v1, %s1171_s29  ;;  %v1113_v11 = vld [vmem:[%s1665_s1 + $0x28] sm:$0xff]   ;;  %v1114_v12 = vld [vmem:[%s1665_s1 + $0x20] sm:$0xff]  }
   0x7   :  { %51 = vst.msk [vmem:[#allocation2 + $0x1a] sm:$0x3f] %vm50_vm1, %v41_v3  ;;  %95 = vst.msk [vmem:[#allocation2 + $0x42] sm:$0x3f] %vm50_vm1, %v45_v8  ;;  %1030 = vmatpush3.bf16.msra.mxu0 %v1111_v9  ;;  %v1115_v13 = vld [vmem:[%s1665_s1 + $0x18] sm:$0xff]  }
   0x8   :  { %49 = vst.msk [vmem:[#allocation2 + $0x12] sm:$0xff] %vm46_vm0, %v40_v4  ;;  %92 = vst.msk [vmem:[#allocation2 + $0x2a] sm:$0xff] %vm46_vm0, %v42_v5  ;;  %1031 = vmatprep.subr.bf16.mxu0 %v1170_v2 }
   0x9   :  { %94 = vst.msk [vmem:[#allocation2 + $0x3a] sm:$0xff] %vm46_vm0, %v44_v6  ;;  %93 = vst.msk [vmem:[#allocation2 + $0x32] sm:$0xff] %vm46_vm0, %v43_v7 }
   0xa   :  { %62 = vrot.lane.b32.xlu1 %v41_v3, %s1171_s29  ;;  %60 = vrot.lane.b32.xlu0 %v40_v4, %s1171_s29 }
   0xb   :  { %1032 = vmatpush3.bf16.msra.mxu0 %v1112_v10 }
   0xc   :  { %1033 = vmatprep.subr.bf16.mxu0 %v1170_v2 }
   0xe   :  { %80 = vrot.lane.b32.xlu1 %v41_v3, %s1169_s28  ;;  %78 = vrot.lane.b32.xlu0 %v40_v4, %s1169_s28 }
   0xf   :  { %1034 = vmatpush3.bf16.msra.mxu0 %v1113_v11 }
  0x10   :  { %1035 = vmatprep.subr.bf16.mxu0 %v1170_v2 }
  0x12   :  { %100 = vrot.lane.b32.xlu0 %v42_v5, %s1171_s29  ;;  %116 = vrot.lane.b32.xlu1 %v42_v5, %s1169_s28 }
  0x13   :  { %1036 = vmatpush3.bf16.msra.mxu0 %v1114_v12 }
  0x14   :  { %12 = vsyncpa [#allocation4], 0  ;;  %1037 = vmatprep.subr.bf16.mxu0 %v1170_v2  ;;  %v1116_v14 = vld [vmem:[%s1665_s1 + $0x10] sm:$0xff]   ;;  %v1117_v15 = vld [vmem:[%s1665_s1 + $0x8] sm:$0xff]   ;;  %vm68_vm3 = vcmask 326816   ;;  %vm86_vm4 = vcmask 490816  }
  0x15   :  { %v1118_v16 = vld [vmem:[%s1665_s1] sm:$0xff]   ;;  %vm72_vm5 = vcmask 324768   ;;  %vm445_vm6 = vcmask 518400   ;;  %vm439_vm7 = vcmask 259072   ;;  %vm90_vm8 = vcmask 488768   ;;  %v1119_v3 = vld [vmem:[%s1667_s3 + $0x38] sm:$0xff]  }
  0x16   :  { %104 = vrot.lane.b32.xlu1 %v44_v6, %s1171_s29  ;;  %102 = vrot.lane.b32.xlu0 %v43_v7, %s1171_s29  ;;  %vm315_vm9 = vcmask 261120   ;;  %v1121_v12 = vld [vmem:[%s1667_s3 + $0x28] sm:$0xff]   ;;  %s1173_s26 = smov 32   ;;  %vm464_vm10 = vcmask 523520   ;;  %vm484_vm11 = vcmask 785920   ;;  %vm468_vm12 = vcmask 521472  }
  0x17   :  { %1038 = vmatpush3.bf16.msra.mxu0 %v1115_v13  ;;  %1066 = vmatpush3.bf16.msra.mxu1 %v1119_v3  ;;  %vm470_vm13 = vcmask 783872   ;;  %vm710_vm15 = vcmask 523264   ;;  %vm859_vm0 = vcmask 521216   ;;  %vm967_vm1 = vcmask 1041409  }
  0x18   :  { %1039 = vmatprep.subr.bf16.mxu0 %v1170_v2  ;;  %1067 = vmatprep.subr.bf16.mxu1 %v1170_v2 }
  0x1a   :  { %120 = vrot.lane.b32.xlu1 %v44_v6, %s1169_s28  ;;  %118 = vrot.lane.b32.xlu0 %v43_v7, %s1169_s28  ;;  %v1120_v7 = vld [vmem:[%s1667_s3 + $0x30] sm:$0xff]  }
  0x1b   :  { %1040 = vmatpush3.bf16.msra.mxu0 %v1116_v14  ;;  %1068 = vmatpush3.bf16.msra.mxu1 %v1120_v7 }
  0x1c   :  { %1041 = vmatprep.subr.bf16.mxu0 %v1170_v2  ;;  %1069 = vmatprep.subr.bf16.mxu1 %v1170_v2 }
  0x1e   :  { %106 = vrot.lane.b32.xlu0 %v45_v8, %s1171_s29  ;;  %122 = vrot.lane.b32.xlu1 %v45_v8, %s1169_s28 }
  0x1f   :  { %1042 = vmatpush3.bf16.msra.mxu0 %v1117_v15  ;;  %1070 = vmatpush3.bf16.msra.mxu1 %v1121_v12 }
  0x20   :  { %1043 = vmatprep.subr.bf16.mxu0 %v1170_v2  ;;  %1071 = vmatprep.subr.bf16.mxu1 %v1170_v2 }
  0x23   :  { %1044 = vmatpush3.bf16.msra.mxu0 %v1118_v16 }
  0x74   :  { %v75_v17 = vpop.permute.xlu1 %74  ;;  %v57_v18 = vpop.permute.xlu0 %56 }
  0x75   :  { %69 = vst.msk [vmem:[#allocation2 + $0x1] sm:$0xff] %vm68_vm3, %v57_v18 }
  0x76   :  { %87 = vst.msk [vmem:[#allocation2] sm:$0xff] %vm86_vm4, %v75_v17 }
  0x78   :  { %v77_v19 = vpop.permute.xlu1 %76  ;;  %v59_v20 = vpop.permute.xlu0 %58 }
  0x79   :  { %70 = vst.msk [vmem:[#allocation2 + $0x9] sm:$0xff] %vm68_vm3, %v59_v20 }
  0x7a   :  { %88 = vst.msk [vmem:[#allocation2 + $0x8] sm:$0xff] %vm86_vm4, %v77_v19  ;;  %v1122_v19 = vld [vmem:[%s1667_s3 + $0x20] sm:$0xff]  }
  0x7b   :  { %1072 = vmatpush3.bf16.msra.mxu1 %v1122_v19 }
  0x7c   :  { %v63_v21 = vpop.permute.xlu1 %62  ;;  %v61_v22 = vpop.permute.xlu0 %60  ;;  %1073 = vmatprep.subr.bf16.mxu1 %v1170_v2 }
  0x7d   :  { %v132_v23 = vld [vmem:[#allocation2] sm:$0xff]  ;;  %73 = vst.msk [vmem:[#allocation2 + $0x19] sm:$0x3f] %vm72_vm5, %v63_v21 }
  0x7e   :  { %71 = vst.msk [vmem:[#allocation2 + $0x11] sm:$0xff] %vm68_vm3, %v61_v22 }
  0x7f   :  { %440 = vst.msk [vmem:[#allocation2] sm:$0x3f] %vm439_vm7, %v1170_v2 }
  0x80   :  { %446 = vst.msk [vmem:[#allocation2] sm:$0x7] %vm445_vm6, %v1170_v2  ;;  %v81_v24 = vpop.permute.xlu1 %80  ;;  %v79_v25 = vpop.permute.xlu0 %78 }
  0x81   :  { %91 = vst.msk [vmem:[#allocation2 + $0x18] sm:$0x3f] %vm90_vm8, %v81_v24  ;;  %v133_v26 = vld [vmem:[#allocation2 + $0x8] sm:$0xff] }
  0x82   :  { %89 = vst.msk [vmem:[#allocation2 + $0x10] sm:$0xff] %vm86_vm4, %v79_v25  ;;  %v142_v27 = vpack.c.bf16 %v133_v26, %v132_v23  ;;  %v1123_v26 = vld [vmem:[%s1667_s3 + $0x18] sm:$0xff]  }
  0x83   :  { %1074 = vmatpush3.bf16.msra.mxu1 %v1123_v26 }
  0x84   :  { %1046 = vmatmul.mubr.bf16.vlgmr.msra.gmra.mxu0 %v142_v27  ;;  %v101_v28 = vpop.permute.xlu0 %100  ;;  %v117_v29 = vpop.permute.xlu1 %116  ;;  %1075 = vmatprep.subr.bf16.mxu1 %v1170_v2 }
  0x85   :  { %112 = vst.msk [vmem:[#allocation2 + $0x29] sm:$0xff] %vm68_vm3, %v101_v28  ;;  %1049 = vmatprep.mubr.msk.bf16.mxu0 %vm1172_vm2, %v1170_v2 }
  0x86   :  { %128 = vst.msk [vmem:[#allocation2 + $0x28] sm:$0xff] %vm86_vm4, %v117_v29 }
  0x88   :  { %v135_v31 = vld [vmem:[#allocation2 + $0x18] sm:$0xff]  ;;  %v105_v32 = vpop.permute.xlu1 %104  ;;  %v103_v33 = vpop.permute.xlu0 %102 }
  0x89   :  { %v134_v30 = vld [vmem:[#allocation2 + $0x10] sm:$0xff]  ;;  %114 = vst.msk [vmem:[#allocation2 + $0x39] sm:$0xff] %vm68_vm3, %v105_v32  ;;  %113 = vst.msk [vmem:[#allocation2 + $0x31] sm:$0xff] %vm68_vm3, %v103_v33 }
  0x8a   :  { %v143_v34 = vpack.c.bf16 %v135_v31, %v134_v30 }
  0x8c   :  { %1050 = vmatmul.mubr.bf16.gmra.mxu0 %v143_v34  ;;  %v121_v35 = vpop.permute.xlu1 %120  ;;  %v119_v36 = vpop.permute.xlu0 %118 }
  0x8d   :  { %v137_v37 = vld [vmem:[#allocation2 + $0x28] sm:$0xff]  ;;  %130 = vst.msk [vmem:[#allocation2 + $0x38] sm:$0xff] %vm86_vm4, %v121_v35  ;;  %129 = vst.msk [vmem:[#allocation2 + $0x30] sm:$0xff] %vm86_vm4, %v119_v36  ;;  %1053 = vmatprep.mubr.msk.bf16.mxu0 %vm1172_vm2, %v1170_v2 }
  0x8e   :  { %489 = vst.msk [vmem:[#allocation2 + $0x28] sm:$0x3f] %vm439_vm7, %v1170_v2  ;;  %v144_v38 = vpack.c.bf16 %v137_v37, %v1170_v2 }
  0x8f   :  { %494 = vst.msk [vmem:[#allocation2 + $0x28] sm:$0x7] %vm445_vm6, %v1170_v2 }
  0x90   :  { %v107_v39 = vpop.permute.xlu0 %106  ;;  %v123_v40 = vpop.permute.xlu1 %122 }
  0x91   :  { %115 = vst.msk [vmem:[#allocation2 + $0x41] sm:$0x3f] %vm72_vm5, %v107_v39 }
  0x92   :  { %131 = vst.msk [vmem:[#allocation2 + $0x40] sm:$0x3f] %vm90_vm8, %v123_v40 }
  0x94   :  { %1054 = vmatmul.mubr.bf16.gmra.mxu0 %v144_v38  ;;  %v138_v41 = vld [vmem:[#allocation2 + $0x30] sm:$0xff]  ;;  %v139_v42 = vld [vmem:[#allocation2 + $0x38] sm:$0xff] }
  0x95   :  { %1057 = vmatprep.mubr.msk.bf16.mxu0 %vm1172_vm2, %v1170_v2  ;;  %v145_v43 = vpack.c.bf16 %v139_v42, %v138_v41 }
  0x99   :  { %v140_v44 = vld [vmem:[#allocation2 + $0x40] sm:$0xff] }
  0x9a   :  { %v146_v45 = vpack.c.bf16 %v1170_v2, %v140_v44 }
  0x9c   :  { %1058 = vmatmul.mubr.bf16.gmra.mxu0 %v145_v43 }
  0x9d   :  { %1061 = vmatprep.mubr.msk.bf16.mxu0 %vm1172_vm2, %v1170_v2 }
  0xa4   :  { %1062 = vmatmul.mubr.bf16.gmra.mxu0 %v146_v45 }
 0x144   :  { %v1344_v46 = vpop.f32.mrf.mxu0 }
 0x145   :  { %v316_v58 = vsel %vm315_vm9, %v1344_v46, 0.0 }
 0x146   :  { %v1047_v47 = vpop.f32.mrf.mxu0 }
 0x148   :  { %v1346_v48 = vpop.f32.mrf.mxu0 }
 0x149   :  { %v317_v56 = vsel %vm315_vm9, %v1346_v48, 0.0 }
 0x14a   :  { %v1048_v49 = vpop.f32.mrf.mxu0  ;;  %v318_v61 = vadd.f32 %v317_v56, %v316_v58 }
 0x14c   :  { %v1348_v50 = vpop.f32.mrf.mxu0 }
 0x14d   :  { %v319_v59 = vsel %vm315_vm9, %v1348_v50, 0.0 }
 0x14e   :  { %v1051_v51 = vpop.f32.mrf.mxu0  ;;  %v320_v0 = vadd.f32 %v319_v59, %v318_v61 }
 0x150   :  { %v1350_v52 = vpop.f32.mrf.mxu0 }
 0x151   :  { %v321_v63 = vsel %vm315_vm9, %v1350_v52, 0.0 }
 0x152   :  { %v1052_v53 = vpop.f32.mrf.mxu0  ;;  %v322_v5 = vadd.f32 %v321_v63, %v320_v0 }
 0x154   :  { %v1352_v54 = vpop.f32.mrf.mxu0 }
 0x155   :  { %v309_v60 = vmul.f32 0.0, %v1352_v54 }
 0x156   :  { %v1055_v55 = vpop.f32.mrf.mxu0 }
 0x157   :  { %v323_v4 = vsel %vm315_vm9, %v309_v60, 0.0 }
 0x158   :  { %v1356_v57 = vpop.f32.mrf.mxu0  ;;  %v324_v8 = vadd.f32 %v323_v4, %v322_v5 }
 0x159   :  { %v325_v10 = vsel %vm315_vm9, %v1356_v57, 0.0 }
 0x15a   :  { %v1056_v62 = vpop.f32.mrf.mxu0  ;;  %v326_v14 = vadd.f32 %v325_v10, %v324_v8 }
 0x15c   :  { %v1365_v1 = vpop.f32.mrf.mxu0 }
 0x15d   :  { %v327_v13 = vsel %vm315_vm9, %v1365_v1, 0.0 }
 0x15e   :  { %v1059_v6 = vpop.f32.mrf.mxu0  ;;  %v328_v17 = vadd.f32 %v327_v13, %v326_v14 }
 0x160   :  { %v1375_v9 = vpop.f32.mrf.mxu0 }
 0x161   :  { %v329_v16 = vsel %vm315_vm9, %v1375_v9, 0.0 }
 0x162   :  { %v1060_v11 = vpop.f32.mrf.mxu0  ;;  %v330_v21 = vadd.f32 %v329_v16, %v328_v17 }
 0x164   :  { %v1385_v15 = vpop.f32.mrf.mxu0 }
 0x165   :  { %v331_v20 = vsel %vm315_vm9, %v1385_v15, 0.0 }
 0x166   :  { %v1063_v18 = vpop.f32.mrf.mxu0  ;;  %v332_v24 = vadd.f32 %v331_v20, %v330_v21 }
 0x168   :  { %v280_v22 = vpop.f32.mrf.mxu0 }
 0x169   :  { %v314_v23 = vmul.f32 0.0, %v280_v22 }
 0x16a   :  { %v1064_v25 = vpop.f32.mrf.mxu0 }
 0x16b   :  { %v333_v27 = vsel %vm315_vm9, %v314_v23, 0.0 }
 0x16c   :  { %v334_v28 = vadd.f32 %v333_v27, %v332_v24 }
 0x16e   :  { %v335_v29 = vrot.slane %v334_v28, 4 }
 0x170   :  { %v336_v30 = vadd.f32 %v335_v29, %v334_v28 }
 0x172   :  { %v337_v31 = vrot.slane %v336_v30, 2 }
 0x174   :  { %v338_v32 = vadd.f32 %v337_v31, %v336_v30  ;;  %v284_v30 = vlaneseq }
 0x176   :  { %v339_v33 = vrot.slane %v338_v32, 1  ;;  %v1420_v31 = vshrl.u32 %v284_v30, 7 }
 0x178   :  { %v340_v34 = vadd.f32 %v339_v33, %v338_v32  ;;  %v398_v32 = vld [vmem:[%s1666_s2] sm:$0x3] }
 0x17a   :  { %v341_v35 = vmul.f32 0.015625, %v340_v34  ;;  %v409_v34 = vsub.s32 0, %v1420_v31 }
 0x17c   :  { %v342_v36 = vsub.f32 %v1344_v46, %v341_v35  ;;  %v343_v37 = vsub.f32 %v1346_v48, %v341_v35  ;;  %v344_v38 = vsub.f32 %v1348_v50, %v341_v35  ;;  %v345_v39 = vsub.f32 %v1350_v52, %v341_v35 }
 0x17d   :  { %v346_v40 = vsub.f32 %v1352_v54, %v341_v35  ;;  %v347_v45 = vsub.f32 %v1356_v57, %v341_v35  ;;  %v348_v55 = vsub.f32 %v1365_v1, %v341_v35  ;;  %v349_v54 = vsub.f32 %v1375_v9, %v341_v35 }
 0x17e   :  { %v362_v41 = vmul.f32 %v342_v36, %v342_v36  ;;  %v363_v42 = vmul.f32 %v343_v37, %v343_v37  ;;  %v364_v44 = vmul.f32 %v344_v38, %v344_v38  ;;  %v365_v47 = vmul.f32 %v345_v39, %v345_v39  ;;  %v1124_v37 = vld [vmem:[%s1667_s3 + $0x10] sm:$0xff]  }
 0x17f   :  { %v356_v43 = vmul.f32 0.0, %v346_v40  ;;  %v351_v60 = vsub.f32 %v280_v22, %v341_v35  ;;  %v367_v61 = vmul.f32 %v347_v45, %v347_v45  ;;  %v350_v0 = vsub.f32 %v1385_v15, %v341_v35  ;;  %1076 = vmatpush3.bf16.msra.mxu1 %v1124_v37 }
 0x180   :  { %v372_v49 = vsel %vm315_vm9, %v362_v41, 0.0  ;;  %v373_v51 = vsel %vm315_vm9, %v363_v42, 0.0  ;;  %v375_v58 = vsel %vm315_vm9, %v364_v44, 0.0  ;;  %v377_v62 = vsel %vm315_vm9, %v365_v47, 0.0  ;;  %1077 = vmatprep.subr.bf16.mxu1 %v1170_v2  ;;  %v1125_v42 = vld [vmem:[%s1667_s3 + $0x8] sm:$0xff]  }
 0x181   :  { %v374_v53 = vadd.f32 %v373_v51, %v372_v49  ;;  %v366_v56 = vmul.f32 %v356_v43, %v356_v43  ;;  %v368_v3 = vmul.f32 %v348_v55, %v348_v55  ;;  %v361_v6 = vmul.f32 0.0, %v351_v60 }
 0x182   :  { %v369_v7 = vmul.f32 %v349_v54, %v349_v54  ;;  %v381_v8 = vsel %vm315_vm9, %v367_v61, 0.0  ;;  %v370_v11 = vmul.f32 %v350_v0, %v350_v0  ;;  %v421_v41 = vsub.s32 1, %v1420_v31 }
 0x183   :  { %v376_v59 = vadd.f32 %v375_v58, %v374_v53  ;;  %v379_v4 = vsel %vm315_vm9, %v366_v56, 0.0  ;;  %v383_v12 = vsel %vm315_vm9, %v368_v3, 0.0  ;;  %v371_v14 = vmul.f32 %v361_v6, %v361_v6  ;;  %1078 = vmatpush3.bf16.msra.mxu1 %v1125_v42  ;;  %v1126_v56 = vld [vmem:[%s1667_s3] sm:$0xff]   ;;  %s1174_s3 = smov 64  }
 0x184   :  { %v385_v16 = vsel %vm315_vm9, %v369_v7, 0.0  ;;  %v387_v18 = vsel %vm315_vm9, %v370_v11, 0.0  ;;  %1079 = vmatprep.subr.bf16.mxu1 %v1170_v2 }
 0x185   :  { %v378_v63 = vadd.f32 %v377_v62, %v376_v59  ;;  %v389_v20 = vsel %vm315_vm9, %v371_v14, 0.0 }
 0x187   :  { %v380_v5 = vadd.f32 %v379_v4, %v378_v63  ;;  %1080 = vmatpush3.bf16.msra.mxu1 %v1126_v56 }
 0x189   :  { %v382_v10 = vadd.f32 %v381_v8, %v380_v5 }
 0x18b   :  { %v384_v13 = vadd.f32 %v383_v12, %v382_v10 }
 0x18d   :  { %v386_v17 = vadd.f32 %v385_v16, %v384_v13 }
 0x18f   :  { %v388_v19 = vadd.f32 %v387_v18, %v386_v17 }
 0x191   :  { %v390_v21 = vadd.f32 %v389_v20, %v388_v19 }
 0x193   :  { %v391_v22 = vrot.slane %v390_v21, 4 }
 0x195   :  { %v392_v23 = vadd.f32 %v391_v22, %v390_v21 }
 0x197   :  { %v393_v24 = vrot.slane %v392_v23, 2 }
 0x199   :  { %v394_v25 = vadd.f32 %v393_v24, %v392_v23 }
 0x19b   :  { %v395_v26 = vrot.slane %v394_v25, 1 }
 0x19d   :  { %v396_v27 = vadd.f32 %v395_v26, %v394_v25 }
 0x19f   :  { %v397_v28 = vmul.f32 0.015625, %v396_v27 }
 0x1a1   :  { %v399_v29 = vadd.f32 1e-05, %v397_v28 }
 0x1a3   :  { %1127 = vrsqrt.f32 %v399_v29 }
 0x1b0   :  { %v1128_v33 = vpop.eup %1127 }
 0x1b1   :  { %v401_v36 = vmul.f32 %v1128_v33, %v398_v32 }
 0x1b3   :  { %v402_v38 = vmul.f32 %v401_v36, %v341_v35  ;;  %v410_v39 = vrot.slane %v401_v36, %v409_v34 }
 0x1b5   :  { %v404_v40 = vrot.slane %v402_v38, 7  ;;  %v412_v44 = vmul.f32 %v410_v39, %v1346_v48  ;;  %v411_v45 = vmul.f32 %v410_v39, %v1344_v46  ;;  %v414_v47 = vmul.f32 %v410_v39, %v1350_v52 }
 0x1b6   :  { %v413_v49 = vmul.f32 %v410_v39, %v1348_v50  ;;  %v415_v51 = vmul.f32 %v410_v39, %v1356_v57  ;;  %v417_v53 = vmul.f32 %v410_v39, %v1375_v9  ;;  %v416_v55 = vmul.f32 %v410_v39, %v1365_v1 }
 0x1b7   :  { %v406_v43 = vsub.f32 %v398_v32, %v404_v40  ;;  %v418_v48 = vmul.f32 %v410_v39, %v1385_v15 }
 0x1b9   :  { %v422_v35 = vrot.slane %v406_v43, %v421_v41 }
 0x1bb   :  { %v424_v58 = vadd.f32 %v422_v35, %v412_v44  ;;  %v423_v46 = vadd.f32 %v422_v35, %v411_v45  ;;  %v426_v59 = vadd.f32 %v422_v35, %v414_v47  ;;  %v425_v52 = vadd.f32 %v422_v35, %v413_v49 }
 0x1bc   :  { %v427_v54 = vadd.f32 %v422_v35, %v415_v51  ;;  %v429_v50 = vadd.f32 %v422_v35, %v417_v53  ;;  %v428_v60 = vadd.f32 %v422_v35, %v416_v55  ;;  %v430_v61 = vadd.f32 %v422_v35, %v418_v48 }
 0x1bd   :  { %v432_v57 = vmax.f32 %v424_v58, 0.0  ;;  %v431_v62 = vmax.f32 %v423_v46, 0.0  ;;  %v434_v9 = vmax.f32 %v426_v59, 0.0  ;;  %v433_v63 = vmax.f32 %v425_v52, 0.0 }
 0x1be   :  { %v435_v1 = vmax.f32 %v427_v54, 0.0  ;;  %v437_v0 = vmax.f32 %v429_v50, 0.0  ;;  %v436_v15 = vmax.f32 %v428_v60, 0.0  ;;  %v438_v3 = vmax.f32 %v430_v61, 0.0 }
 0x1bf   :  { %454 = vrot.lane.b32.xlu1 %v432_v57, %s1173_s26  ;;  %442 = vst.msk [vmem:[#allocation2 + $0xe] sm:$0xff] %vm315_vm9, %v432_v57  ;;  %452 = vrot.lane.b32.xlu0 %v431_v62, %s1173_s26  ;;  %441 = vst.msk [vmem:[#allocation2 + $0x6] sm:$0xff] %vm315_vm9, %v431_v62  ;;  %v289_v47 = vadd.s32 32, %v1420_v31  ;;  %v835_v31 = vld [vmem:[%s1669_s5 + $0x8] sm:$0xff] }
 0x1c0   :  { %444 = vst.msk [vmem:[#allocation2 + $0x1e] sm:$0x3f] %vm439_vm7, %v434_v9  ;;  %493 = vst.msk [vmem:[#allocation2 + $0x46] sm:$0x3f] %vm439_vm7, %v438_v3 }
 0x1c1   :  { %443 = vst.msk [vmem:[#allocation2 + $0x16] sm:$0xff] %vm315_vm9, %v433_v63  ;;  %490 = vst.msk [vmem:[#allocation2 + $0x2e] sm:$0xff] %vm315_vm9, %v435_v1  ;;  %vm689_vm14 = vcmp.lt.s32.totalorder %v289_v47, 36 }
 0x1c2   :  { %447 = vst.msk [vmem:[#allocation2 + $0x21] sm:$0x7] %vm445_vm6, %v1170_v2  ;;  %495 = vst.msk [vmem:[#allocation2 + $0x49] sm:$0x7] %vm445_vm6, %v1170_v2  ;;  %v1500_v55 = vsel %vm689_vm14, 1.0, %v1170_v2 }
 0x1c3   :  { %492 = vst.msk [vmem:[#allocation2 + $0x3e] sm:$0xff] %vm315_vm9, %v437_v0  ;;  %491 = vst.msk [vmem:[#allocation2 + $0x36] sm:$0xff] %vm315_vm9, %v436_v15  ;;  %474 = vrot.lane.b32.xlu1 %v432_v57, %s1174_s3  ;;  %472 = vrot.lane.b32.xlu0 %v431_v62, %s1174_s3 }
 0x1c7   :  { %458 = vrot.lane.b32.xlu1 %v434_v9, %s1173_s26  ;;  %456 = vrot.lane.b32.xlu0 %v433_v63, %s1173_s26 }
 0x1cb   :  { %478 = vrot.lane.b32.xlu1 %v434_v9, %s1174_s3  ;;  %476 = vrot.lane.b32.xlu0 %v433_v63, %s1174_s3 }
 0x1cf   :  { %517 = vrot.lane.b32.xlu1 %v435_v1, %s1174_s3  ;;  %500 = vrot.lane.b32.xlu0 %v435_v1, %s1173_s26 }
 0x1d3   :  { %504 = vrot.lane.b32.xlu1 %v437_v0, %s1173_s26  ;;  %502 = vrot.lane.b32.xlu0 %v436_v15, %s1173_s26 }
 0x1d7   :  { %521 = vrot.lane.b32.xlu1 %v437_v0, %s1174_s3  ;;  %519 = vrot.lane.b32.xlu0 %v436_v15, %s1174_s3 }
 0x1db   :  { %523 = vrot.lane.b32.xlu1 %v438_v3, %s1174_s3  ;;  %506 = vrot.lane.b32.xlu0 %v438_v3, %s1173_s26 }
 0x231   :  { %v455_v4 = vpop.permute.xlu1 %454  ;;  %v453_v5 = vpop.permute.xlu0 %452 }
 0x232   :  { %466 = vst.msk [vmem:[#allocation2 + $0xb] sm:$0xff] %vm464_vm10, %v455_v4  ;;  %465 = vst.msk [vmem:[#allocation2 + $0x3] sm:$0xff] %vm464_vm10, %v453_v5 }
 0x235   :  { %v475_v6 = vpop.permute.xlu1 %474  ;;  %v473_v7 = vpop.permute.xlu0 %472 }
 0x236   :  { %486 = vst.msk [vmem:[#allocation2 + $0x8] sm:$0xff] %vm484_vm11, %v475_v6  ;;  %485 = vst.msk [vmem:[#allocation2] sm:$0xff] %vm484_vm11, %v473_v7 }
 0x239   :  { %v459_v8 = vpop.permute.xlu1 %458  ;;  %v457_v10 = vpop.permute.xlu0 %456 }
 0x23a   :  { %469 = vst.msk [vmem:[#allocation2 + $0x1b] sm:$0x3f] %vm468_vm12, %v459_v8 }
 0x23b   :  { %467 = vst.msk [vmem:[#allocation2 + $0x13] sm:$0xff] %vm464_vm10, %v457_v10 }
 0x23c   :  { %471 = vst.msk [vmem:[#allocation2 + $0x1e] sm:$0x3f] %vm470_vm13, %v1170_v2 }
 0x23d   :  { %v479_v11 = vpop.permute.xlu1 %478  ;;  %v477_v12 = vpop.permute.xlu0 %476  ;;  %v533_v13 = vld [vmem:[#allocation2] sm:$0xff]  ;;  %v534_v14 = vld [vmem:[#allocation2 + $0x8] sm:$0xff] }
 0x23e   :  { %488 = vst.msk [vmem:[#allocation2 + $0x18] sm:$0x3f] %vm470_vm13, %v479_v11  ;;  %v543_v16 = vpack.c.bf16 %v534_v14, %v533_v13 }
 0x23f   :  { %487 = vst.msk [vmem:[#allocation2 + $0x10] sm:$0xff] %vm484_vm11, %v477_v12 }
 0x240   :  { %1082 = vmatmul.mubr.bf16.vlgmr.msra.gmra.mxu1 %v543_v16 }
 0x241   :  { %v518_v17 = vpop.permute.xlu1 %517  ;;  %v501_v18 = vpop.permute.xlu0 %500  ;;  %1085 = vmatprep.mubr.msk.bf16.mxu1 %vm1172_vm2, %v1170_v2 }
 0x242   :  { %512 = vst.msk [vmem:[#allocation2 + $0x2b] sm:$0xff] %vm464_vm10, %v501_v18 }
 0x243   :  { %529 = vst.msk [vmem:[#allocation2 + $0x28] sm:$0xff] %vm484_vm11, %v518_v17  ;;  %v537_v26 = vld [vmem:[#allocation2 + $0x20] sm:$0xff] }
 0x245   :  { %v505_v19 = vpop.permute.xlu1 %504  ;;  %v503_v20 = vpop.permute.xlu0 %502  ;;  %v536_v22 = vld [vmem:[#allocation2 + $0x18] sm:$0xff] }
 0x246   :  { %v535_v21 = vld [vmem:[#allocation2 + $0x10] sm:$0xff]  ;;  %514 = vst.msk [vmem:[#allocation2 + $0x3b] sm:$0xff] %vm464_vm10, %v505_v19  ;;  %513 = vst.msk [vmem:[#allocation2 + $0x33] sm:$0xff] %vm464_vm10, %v503_v20 }
 0x247   :  { %v544_v23 = vpack.c.bf16 %v536_v22, %v535_v21 }
 0x249   :  { %1086 = vmatmul.mubr.bf16.gmra.mxu1 %v544_v23  ;;  %v522_v24 = vpop.permute.xlu1 %521  ;;  %v520_v25 = vpop.permute.xlu0 %519 }
 0x24a   :  { %1089 = vmatprep.mubr.msk.bf16.mxu1 %vm1172_vm2, %v1170_v2  ;;  %531 = vst.msk [vmem:[#allocation2 + $0x38] sm:$0xff] %vm484_vm11, %v522_v24  ;;  %530 = vst.msk [vmem:[#allocation2 + $0x30] sm:$0xff] %vm484_vm11, %v520_v25  ;;  %v538_v27 = vld [vmem:[#allocation2 + $0x28] sm:$0xff] }
 0x24b   :  { %v545_v30 = vpack.c.bf16 %v538_v27, %v537_v26 }
 0x24d   :  { %v524_v28 = vpop.permute.xlu1 %523  ;;  %v507_v29 = vpop.permute.xlu0 %506 }
 0x24e   :  { %515 = vst.msk [vmem:[#allocation2 + $0x43] sm:$0x3f] %vm468_vm12, %v507_v29 }
 0x24f   :  { %516 = vst.msk [vmem:[#allocation2 + $0x46] sm:$0x3f] %vm470_vm13, %v1170_v2  ;;  %532 = vst.msk [vmem:[#allocation2 + $0x40] sm:$0x3f] %vm470_vm13, %v524_v28 }
 0x251   :  { %1090 = vmatmul.mubr.bf16.gmra.mxu1 %v545_v30  ;;  %v539_v32 = vld [vmem:[#allocation2 + $0x30] sm:$0xff]  ;;  %v540_v33 = vld [vmem:[#allocation2 + $0x38] sm:$0xff] }
 0x252   :  { %1093 = vmatprep.mubr.msk.bf16.mxu1 %vm1172_vm2, %v1170_v2  ;;  %v546_v36 = vpack.c.bf16 %v540_v33, %v539_v32 }
 0x256   :  { %v541_v37 = vld [vmem:[#allocation2 + $0x40] sm:$0xff]  ;;  %v542_v38 = vld [vmem:[#allocation2 + $0x48] sm:$0xff] }
 0x257   :  { %v547_v39 = vpack.c.bf16 %v542_v38, %v541_v37 }
 0x259   :  { %1094 = vmatmul.mubr.bf16.gmra.mxu1 %v546_v36 }
 0x25a   :  { %1097 = vmatprep.mubr.msk.bf16.mxu1 %vm1172_vm2, %v1170_v2  ;;  %vm970_vm2 = vcmask 517120  }
 0x261   :  { %1098 = vmatmul.mubr.bf16.gmra.mxu1 %v547_v39 }
 0x300   :  { %v1490_v40 = vpop.f32.mrf.mxu1 }
 0x301   :  { %v711_v46 = vsel %vm710_vm15, %v1490_v40, 0.0 }
 0x302   :  { %v1083_v42 = vpop.f32.mrf.mxu1 }
 0x304   :  { %v1492_v43 = vpop.f32.mrf.mxu1 }
 0x305   :  { %v712_v56 = vsel %vm710_vm15, %v1492_v43, 0.0 }
 0x306   :  { %v1084_v44 = vpop.f32.mrf.mxu1  ;;  %v713_v54 = vadd.f32 %v712_v56, %v711_v46 }
 0x309   :  { %v1494_v35 = vpop.f32.mrf.mxu1 }
 0x30a   :  { %v714_v59 = vsel %vm710_vm15, %v1494_v35, 0.0 }
 0x30b   :  { %v1087_v45 = vpop.f32.mrf.mxu1  ;;  %v715_v60 = vadd.f32 %v714_v59, %v713_v54 }
 0x30d   :  { %v1497_v49 = vpop.f32.mrf.mxu1 }
 0x30e   :  { %v716_v2 = vsel %vm710_vm15, %v1497_v49, 0.0 }
 0x30f   :  { %v1088_v51 = vpop.f32.mrf.mxu1  ;;  %v717_v62 = vadd.f32 %v716_v2, %v715_v60 }
 0x311   :  { %v662_v53 = vpop.f32.mrf.mxu1 }
 0x312   :  { %v704_v52 = vmul.f32 %v1500_v55, %v662_v53 }
 0x313   :  { %v1091_v48 = vpop.f32.mrf.mxu1 }
 0x314   :  { %v718_v57 = vsel %vm710_vm15, %v704_v52, 0.0 }
 0x315   :  { %v1504_v58 = vpop.f32.mrf.mxu1  ;;  %v719_v63 = vadd.f32 %v718_v57, %v717_v62 }
 0x316   :  { %v720_v0 = vsel %vm710_vm15, %v1504_v58, 0.0 }
 0x317   :  { %v1092_v50 = vpop.f32.mrf.mxu1  ;;  %v721_v4 = vadd.f32 %v720_v0, %v719_v63 }
 0x319   :  { %v1513_v61 = vpop.f32.mrf.mxu1 }
 0x31a   :  { %v722_v3 = vsel %vm710_vm15, %v1513_v61, 0.0 }
 0x31b   :  { %v1095_v9 = vpop.f32.mrf.mxu1  ;;  %v723_v7 = vadd.f32 %v722_v3, %v721_v4 }
 0x31d   :  { %v1516_v1 = vpop.f32.mrf.mxu1 }
 0x31e   :  { %v724_v6 = vsel %vm710_vm15, %v1516_v1, 0.0 }
 0x31f   :  { %v1096_v15 = vpop.f32.mrf.mxu1  ;;  %v725_v11 = vadd.f32 %v724_v6, %v723_v7 }
 0x321   :  { %v1522_v5 = vpop.f32.mrf.mxu1 }
 0x322   :  { %v726_v10 = vsel %vm710_vm15, %v1522_v5, 0.0 }
 0x323   :  { %v1099_v8 = vpop.f32.mrf.mxu1  ;;  %v727_v14 = vadd.f32 %v726_v10, %v725_v11 }
 0x325   :  { %v681_v12 = vpop.f32.mrf.mxu1 }
 0x326   :  { %v709_v13 = vmul.f32 %v1500_v55, %v681_v12 }
 0x327   :  { %v1100_v16 = vpop.f32.mrf.mxu1 }
 0x328   :  { %v728_v17 = vsel %vm710_vm15, %v709_v13, 0.0 }
 0x329   :  { %v729_v18 = vadd.f32 %v728_v17, %v727_v14 }
 0x32b   :  { %v730_v19 = vrot.slane %v729_v18, 4 }
 0x32d   :  { %v731_v20 = vadd.f32 %v730_v19, %v729_v18 }
 0x32f   :  { %v732_v21 = vrot.slane %v731_v20, 2 }
 0x331   :  { %v733_v22 = vadd.f32 %v732_v21, %v731_v20 }
 0x333   :  { %v734_v23 = vrot.slane %v733_v22, 1 }
 0x335   :  { %v735_v24 = vadd.f32 %v734_v23, %v733_v22  ;;  %v793_v22 = vld [vmem:[%s1668_s4] sm:$0x3] }
 0x337   :  { %v736_v25 = vmul.f32 0.013888889, %v735_v24 }
 0x339   :  { %v737_v26 = vsub.f32 %v1490_v40, %v736_v25  ;;  %v738_v27 = vsub.f32 %v1492_v43, %v736_v25  ;;  %v739_v28 = vsub.f32 %v1494_v35, %v736_v25  ;;  %v740_v29 = vsub.f32 %v1497_v49, %v736_v25 }
 0x33a   :  { %v741_v30 = vsub.f32 %v662_v53, %v736_v25  ;;  %v742_v38 = vsub.f32 %v1504_v58, %v736_v25  ;;  %v743_v47 = vsub.f32 %v1513_v61, %v736_v25  ;;  %v744_v53 = vsub.f32 %v1516_v1, %v736_v25 }
 0x33b   :  { %v757_v32 = vmul.f32 %v737_v26, %v737_v26  ;;  %v758_v33 = vmul.f32 %v738_v27, %v738_v27  ;;  %v759_v37 = vmul.f32 %v739_v28, %v739_v28  ;;  %v760_v39 = vmul.f32 %v740_v29, %v740_v29 }
 0x33c   :  { %v751_v36 = vmul.f32 %v1500_v55, %v741_v30  ;;  %v746_v46 = vsub.f32 %v681_v12, %v736_v25  ;;  %v762_v59 = vmul.f32 %v742_v38, %v742_v38  ;;  %v745_v50 = vsub.f32 %v1522_v5, %v736_v25 }
 0x33d   :  { %v767_v42 = vsel %vm710_vm15, %v757_v32, 0.0  ;;  %v768_v44 = vsel %vm710_vm15, %v758_v33, 0.0  ;;  %v770_v48 = vsel %vm710_vm15, %v759_v37, 0.0  ;;  %v772_v52 = vsel %vm710_vm15, %v760_v39, 0.0 }
 0x33e   :  { %v769_v45 = vadd.f32 %v768_v44, %v767_v42  ;;  %v761_v51 = vmul.f32 %v751_v36, %v751_v36  ;;  %v763_v2 = vmul.f32 %v743_v47, %v743_v47  ;;  %v756_v62 = vmul.f32 %v1500_v55, %v746_v46 }
 0x33f   :  { %v764_v9 = vmul.f32 %v744_v53, %v744_v53  ;;  %v776_v63 = vsel %vm710_vm15, %v762_v59, 0.0  ;;  %v765_v15 = vmul.f32 %v745_v50, %v745_v50  ;;  %v837_v50 = vld [vmem:[%s1669_s5 + $0x18] sm:$0x3f] }
 0x340   :  { %v771_v56 = vadd.f32 %v770_v48, %v769_v45  ;;  %v774_v60 = vsel %vm710_vm15, %v761_v51, 0.0  ;;  %v778_v3 = vsel %vm710_vm15, %v763_v2, 0.0  ;;  %v766_v6 = vmul.f32 %v756_v62, %v756_v62  ;;  %v836_v45 = vld [vmem:[%s1669_s5 + $0x10] sm:$0xff] }
 0x341   :  { %v780_v7 = vsel %vm710_vm15, %v764_v9, 0.0  ;;  %v782_v10 = vsel %vm710_vm15, %v765_v15, 0.0 }
 0x342   :  { %v773_v54 = vadd.f32 %v772_v52, %v771_v56  ;;  %v784_v12 = vsel %vm710_vm15, %v766_v6, 0.0 }
 0x344   :  { %v775_v57 = vadd.f32 %v774_v60, %v773_v54 }
 0x346   :  { %v777_v0 = vadd.f32 %v776_v63, %v775_v57 }
 0x348   :  { %v779_v4 = vadd.f32 %v778_v3, %v777_v0 }
 0x34a   :  { %v781_v8 = vadd.f32 %v780_v7, %v779_v4 }
 0x34c   :  { %v783_v11 = vadd.f32 %v782_v10, %v781_v8  ;;  %v1175_v10 = vmov 0  }
 0x34d   :  { %1110 = vset.pattern.permute.xlu0 %v1175_v10  ;;  %1109 = vset.pattern.permute.xlu1 %v1175_v10 }
 0x34e   :  { %v785_v13 = vadd.f32 %v784_v12, %v783_v11  ;;  %v839_v11 = vld [vmem:[%s1670_s6 + $0x8] sm:$0xff]  ;;  %v838_v12 = vld [vmem:[%s1670_s6] sm:$0xff] }
 0x350   :  { %v786_v14 = vrot.slane %v785_v13, 4 }
 0x352   :  { %v787_v55 = vadd.f32 %v786_v14, %v785_v13 }
 0x354   :  { %v788_v16 = vrot.slane %v787_v55, 2 }
 0x356   :  { %v789_v17 = vadd.f32 %v788_v16, %v787_v55 }
 0x358   :  { %v790_v18 = vrot.slane %v789_v17, 1 }
 0x35a   :  { %v791_v19 = vadd.f32 %v790_v18, %v789_v17 }
 0x35c   :  { %v792_v20 = vmul.f32 0.013888889, %v791_v19 }
 0x35e   :  { %v794_v21 = vadd.f32 1e-05, %v792_v20  ;;  %v840_v20 = vld [vmem:[%s1670_s6 + $0x10] sm:$0xff] }
 0x360   :  { %1129 = vrsqrt.f32 %v794_v21 }
 0x36d   :  { %v1130_v23 = vpop.eup %1129 }
 0x36e   :  { %v796_v24 = vmul.f32 %v1130_v23, %v793_v22 }
 0x370   :  { %v797_v26 = vmul.f32 %v796_v24, %v736_v25  ;;  %v805_v27 = vrot.slane %v796_v24, %v409_v34 }
 0x372   :  { %v799_v28 = vrot.slane %v797_v26, 7  ;;  %v807_v30 = vmul.f32 %v805_v27, %v1492_v43  ;;  %v806_v33 = vmul.f32 %v805_v27, %v1490_v40  ;;  %v808_v36 = vmul.f32 %v805_v27, %v1494_v35 }
 0x373   :  { %v810_v37 = vmul.f32 %v805_v27, %v1504_v58  ;;  %v809_v38 = vmul.f32 %v805_v27, %v1497_v49  ;;  %v811_v25 = vmul.f32 %v805_v27, %v1513_v61  ;;  %v812_v47 = vmul.f32 %v805_v27, %v1516_v1 }
 0x374   :  { %v801_v29 = vsub.f32 %v793_v22, %v799_v28  ;;  %v813_v2 = vmul.f32 %v805_v27, %v1522_v5 }
 0x376   :  { %v817_v32 = vrot.slane %v801_v29, %v421_v41  ;;  %v834_v41 = vld [vmem:[%s1669_s5] sm:$0xff]  ;;  %v841_v29 = vld [vmem:[%s1670_s6 + $0x18] sm:$0x3f]  ;;  %s1176_s6 = smov [#allocation3]  }
 0x377   :  { %s978_s19 = sshll.u32 %s1176_s6, 4  ;;  %s979_s19 = int_to_ptr.vmem [resolvable:$true] %s978_s19 }
 0x378   :  { %v1563_v39 = vadd.f32 %v817_v32, %v807_v30  ;;  %v1565_v34 = vadd.f32 %v817_v32, %v806_v33  ;;  %v1567_v42 = vadd.f32 %v817_v32, %v808_v36  ;;  %v1569_v43 = vadd.f32 %v817_v32, %v810_v37  ;;  %s1147_s20 = scalar_lea.vmem %s979_s19, 32  ;;  %p1152_p1 = scmp.lt.s32.totalorder %s979_s19, %s979_s19 }
 0x379   :  { %v1577_v40 = vadd.f32 %v817_v32, %v809_v38  ;;  %v1579_v35 = vadd.f32 %v817_v32, %v811_v25  ;;  %v1595_v46 = vadd.f32 %v817_v32, %v812_v47  ;;  %v1608_v57 = vadd.f32 %v817_v32, %v813_v2  ;;  %p1148_p0 = scmp.ne.s32.totalorder %s979_s19, %s1147_s20  ;;  %p1153_p2 = scmp.lt.s32.totalorder %s1147_s20, %s1147_s20 }
 0x37a   :  { %v827_v49 = vmax.f32 %v1563_v39, 0.0  ;;  %v826_v58 = vmax.f32 %v1565_v34, 0.0  ;;  %v828_v61 = vmax.f32 %v1567_v42, 0.0  ;;  %v830_v44 = vmax.f32 %v1569_v43, 0.0 }
 0x37b   :  { %v829_v56 = vmax.f32 %v1577_v40, 0.0  ;;  %v831_v53 = vmax.f32 %v1579_v35, 0.0  ;;  %v832_v60 = vmax.f32 %v1595_v46, 0.0  ;;  %v833_v4 = vmax.f32 %v1608_v57, 0.0  ;;  %p1154_p3 = por %p1153_p2, %p1152_p1 }
 0x37c   :  { %v843_v51 = vmul.f32 %v835_v31, %v827_v49  ;;  %v842_v48 = vmul.f32 %v834_v41, %v826_v58  ;;  %v844_v54 = vmul.f32 %v836_v45, %v828_v61  ;;  %v846_v1 = vmul.f32 %v834_v41, %v830_v44 }
 0x37d   :  { %v845_v63 = vmul.f32 %v837_v50, %v829_v56  ;;  %v847_v0 = vmul.f32 %v835_v31, %v831_v53  ;;  %v848_v3 = vmul.f32 %v836_v45, %v832_v60  ;;  %v849_v7 = vmul.f32 %v837_v50, %v833_v4  ;;  %p1155_p4 = pnand %p1154_p3, %p1148_p0 }
 0x37e   :  { %v853_v59 = vsel %vm710_vm15, %v843_v51, 0.0  ;;  %v850_v52 = vsel %vm710_vm15, %v842_v48, 0.0  ;;  %v856_v62 = vsel %vm710_vm15, %v844_v54, 0.0  ;;  %v863_v9 = vsel %vm710_vm15, %v846_v1, 0.0 }
 0x37f   :  { %854 = vadd.xlane.f32.xlu1 %v853_v59  ;;  %851 = vadd.xlane.f32.xlu0 %v850_v52  ;;  %v860_v15 = vsel %vm859_vm0, %v845_v63, 0.0  ;;  %v866_v5 = vsel %vm710_vm15, %v847_v0, 0.0  ;;  %v869_v6 = vsel %vm710_vm15, %v848_v3, 0.0  ;;  %v872_v8 = vsel %vm859_vm0, %v849_v7, 0.0 }
 0x383   :  { %857 = vadd.xlane.f32.xlu1 %v856_v62  ;;  %864 = vadd.xlane.f32.xlu0 %v863_v9 }
 0x387   :  { %861 = vadd.xlane.f32.xlu1 %v860_v15  ;;  %867 = vadd.xlane.f32.xlu0 %v866_v5 }
 0x38b   :  { %870 = vadd.xlane.f32.xlu0 %v869_v6 }
 0x38f   :  { %873 = vadd.xlane.f32.xlu0 %v872_v8 }
 0x408   :  { %v855_v13 = vpop.xlane.xlu1 %854  ;;  %v852_v14 = vpop.xlane.xlu0 %851 }
 0x409   :  { %v876_v55 = vadd.f32 %v855_v13, %v839_v11  ;;  %v875_v16 = vadd.f32 %v852_v14, %v838_v12 }
 0x40b   :  { %1131 = vtanh.f32 %v876_v55 }
 0x40c   :  { %1133 = vtanh.f32 %v875_v16  ;;  %v865_v17 = vpop.xlane.xlu0 %864  ;;  %v858_v21 = vpop.xlane.xlu1 %857 }
 0x40d   :  { %v879_v18 = vadd.f32 %v865_v17, %v838_v12  ;;  %v877_v23 = vadd.f32 %v858_v21, %v840_v20 }
 0x40f   :  { %1135 = vtanh.f32 %v879_v18 }
 0x410   :  { %v868_v19 = vpop.xlane.xlu0 %867  ;;  %v862_v30 = vpop.xlane.xlu1 %861 }
 0x411   :  { %v880_v22 = vadd.f32 %v868_v19, %v839_v11  ;;  %v878_v32 = vadd.f32 %v862_v30, %v841_v29 }
 0x413   :  { %1137 = vtanh.f32 %v880_v22 }
 0x414   :  { %v871_v24 = vpop.xlane.xlu0 %870  ;;  %1139 = vtanh.f32 %v877_v23 }
 0x415   :  { %v881_v27 = vadd.f32 %v871_v24, %v840_v20 }
 0x417   :  { %1141 = vtanh.f32 %v881_v27 }
 0x418   :  { %v1132_v26 = vpop.eup %1131  ;;  %v874_v36 = vpop.xlane.xlu0 %873  ;;  %1143 = vtanh.f32 %v878_v32 }
 0x419   :  { %v1134_v28 = vpop.eup %1133  ;;  %898 = vperm.xlu0 %1110, %v1132_v26   ;;  %v882_v37 = vadd.f32 %v874_v36, %v841_v29 }
 0x41a   :  { %893 = vperm.xlu1 %1109, %v1134_v28  }
 0x41b   :  { %1145 = vtanh.f32 %v882_v37 }
 0x41c   :  { %v1136_v33 = vpop.eup %1135 }
 0x41e   :  { %913 = vperm.xlu1 %1109, %v1136_v33  }
 0x420   :  { %v1138_v38 = vpop.eup %1137 }
 0x421   :  { %v1140_v25 = vpop.eup %1139 }
 0x422   :  { %918 = vperm.xlu1 %1109, %v1138_v38  }
 0x424   :  { %v1142_v31 = vpop.eup %1141 }
 0x425   :  { %v1144_v41 = vpop.eup %1143 }
 0x426   :  { %903 = vperm.xlu1 %1109, %v1140_v25  }
 0x428   :  { %v1146_v45 = vpop.eup %1145 }
 0x42a   :  { %923 = vperm.xlu1 %1109, %v1142_v31  }
 0x42e   :  { %908 = vperm.xlu1 %1109, %v1144_v41  }
 0x432   :  { %928 = vperm.xlu1 %1109, %v1146_v45  }
 0x494   :  { %v899_v59 = vpop.permute.xlu0 %898 }
 0x495   :  { %v894_v47 = vpop.permute.xlu1 %893  ;;  %v932_v1 = vmul.f32 %v899_v59, %v827_v49 }
 0x496   :  { %v931_v54 = vmul.f32 %v894_v47, %v826_v58 }
 0x497   :  { %v940_v9 = vsel %vm710_vm15, %v932_v1, 0.0 }
 0x498   :  { %v939_v62 = vsel %vm710_vm15, %v931_v54, 0.0 }
 0x499   :  { %v914_v51 = vpop.permute.xlu1 %913  ;;  %v941_v49 = vadd.f32 %v940_v9, %v939_v62 }
 0x49a   :  { %v935_v0 = vmul.f32 %v914_v51, %v830_v44 }
 0x49c   :  { %v952_v5 = vsel %vm710_vm15, %v935_v0, 0.0 }
 0x49d   :  { %v919_v48 = vpop.permute.xlu1 %918 }
 0x49e   :  { %v936_v63 = vmul.f32 %v919_v48, %v831_v53 }
 0x4a0   :  { %v953_v42 = vsel %vm710_vm15, %v936_v63, 0.0 }
 0x4a1   :  { %v904_v52 = vpop.permute.xlu1 %903  ;;  %v954_v44 = vadd.f32 %v953_v42, %v952_v5 }
 0x4a2   :  { %v933_v50 = vmul.f32 %v904_v52, %v828_v61 }
 0x4a4   :  { %v942_v34 = vsel %vm710_vm15, %v933_v50, 0.0 }
 0x4a5   :  { %v924_v2 = vpop.permute.xlu1 %923  ;;  %v943_v15 = vadd.f32 %v942_v34, %v941_v49 }
 0x4a6   :  { %v937_v39 = vmul.f32 %v924_v2, %v832_v60 }
 0x4a8   :  { %v955_v35 = vsel %vm710_vm15, %v937_v39, 0.0 }
 0x4a9   :  { %v909_v58 = vpop.permute.xlu1 %908  ;;  %v956_v60 = vadd.f32 %v955_v35, %v954_v44 }
 0x4aa   :  { %v934_v61 = vmul.f32 %v909_v58, %v829_v56 }
 0x4ac   :  { %v944_v43 = vsel %vm859_vm0, %v934_v61, 0.0 }
 0x4ad   :  { %v945_v53 = vadd.f32 %v944_v43, %v943_v15  ;;  %v929_v3 = vpop.permute.xlu1 %928 }
 0x4ae   :  { %v938_v46 = vmul.f32 %v929_v3, %v833_v4 }
 0x4af   :  { %v946_v6 = vrot.slane %v945_v53, 4 }
 0x4b0   :  { %v957_v7 = vsel %vm859_vm0, %v938_v46, 0.0 }
 0x4b1   :  { %v947_v8 = vadd.f32 %v946_v6, %v945_v53  ;;  %v958_v40 = vadd.f32 %v957_v7, %v956_v60 }
 0x4b3   :  { %v948_v56 = vrot.slane %v947_v8, 2  ;;  %v959_v10 = vrot.slane %v958_v40, 4 }
 0x4b5   :  { %v949_v11 = vadd.f32 %v948_v56, %v947_v8  ;;  %v960_v12 = vadd.f32 %v959_v10, %v958_v40 }
 0x4b7   :  { %v961_v13 = vrot.slane %v960_v12, 2  ;;  %v950_v55 = vrot.slane %v949_v11, 1 }
 0x4b9   :  { %v962_v14 = vadd.f32 %v961_v13, %v960_v12  ;;  %v951_v17 = vadd.f32 %v950_v55, %v949_v11 }
 0x4bb   :  { %v963_v16 = vrot.slane %v962_v14, 1 }
 0x4bd   :  { %v964_v57 = vadd.f32 %v963_v16, %v962_v14 }
 0x4bf   :  { %v968_v4 = vsel %vm967_vm1, %v964_v57, %v951_v17 }
 0x4c0   :  { %971 = vst.msk [vmem:[#allocation3] sm:$0x3] %vm970_vm2, %v968_v4 }
 0x4c1   :  { %1158 = shalt.err (!%p1155_p4)
}
 0x4c2   :  { %981 = dma.vmem_to_hbm [thread:$0]  %s979_s19, 32, %s1671_s7, [#allocation4]  }
 0x4c3   :  { %1167 = dma.done.wait [#allocation4], 32  }
 0x4c4   :  { %1168 = vsyncadd [#allocation4], 4294967264 }
 0x4c5   :  { %985 = vsyncpa [#allocation4], 1 }

</bundles_post_ra>
